<compile_context>
chip_gen: v6e
topology: v6e:2x2x1
jax: 0.10.0
libtpu: 0.0.40
codegen_flags: <defaults>
</compile_context>

<pallas_src>
import functools

import jax
import jax.numpy as jnp
from jax.experimental import pallas as pl
from jax.experimental.pallas import tpu as pltpu

TM_MAX = 512               # packed-row tile (review: raise from 128)
LANE = 128                 # vreg lane width (K alignment / FC output padding)
MIN_ROWS_FOR_SPLIT = 256   # only force a 2-way split when each TC gets >=128 rows


@functools.lru_cache(maxsize=None)
def chip_config():
    """Per-generation knobs; safe fallback is the v5e-style 128-lane packing."""
    kind = ""
    try:
        kind = jax.devices()[0].device_kind.lower()
    except Exception:
        pass
    wide_mxu = ("v6" in kind) or ("v7" in kind) or ("7x" in kind)
    return {
        # v6e/v7x MXU is 2x256^2 bf16 -> 256-lane output slabs; v5e is 4x128^2
        # -> keep 128 (256 would double wasted zero-MACs in the kron weight).
        "slab": 256 if wide_mxu else 128,
        # v7x has 2 TensorCores per chip.
        "two_cores": ("v7" in kind) or ("7x" in kind),
    }


# ----------------------------------------------------------------------------
# Pallas kernels
# ----------------------------------------------------------------------------
def _matmul_bias_relu_kernel(x_ref, w_ref, b_ref, o_ref):
    # x: (TM, K) bf16, w: (K, N) bf16, b: (1, N) f32 -> o: (TM, N)
    acc = jnp.dot(x_ref[...], w_ref[...], preferred_element_type=jnp.float32)
    acc = acc + b_ref[...]
    o_ref[...] = jnp.maximum(acc, 0.0).astype(o_ref.dtype)


def _matmul_bias_softmax_kernel(x_ref, w_ref, b_ref, o_ref):
    # x: (TM, K) bf16, w: (K, N) bf16, b: (1, N) f32 -> row softmax over N.
    # Padded output lanes carry bias = -1e30 (kept in f32) so they exp() to 0.
    logits = jnp.dot(x_ref[...], w_ref[...], preferred_element_type=jnp.float32)
    logits = logits + b_ref[...]
    m = jnp.max(logits, axis=-1, keepdims=True)
    e = jnp.exp(logits - m)
    o_ref[...] = (e / jnp.sum(e, axis=-1, keepdims=True)).astype(o_ref.dtype)


def _round_up(x, m):
    return (x + m - 1) // m * m


def _pick_tm(m_pad):
    cfg = chip_config()
    tm = min(TM_MAX, m_pad)
    if cfg["two_cores"] and m_pad > MIN_ROWS_FOR_SPLIT:
        # Guarantee >=2 grid steps so ("parallel",) shards across v7x's 2 TCs,
        # but only when each per-core tile is still big enough to amortize the
        # ~0.35us/step grid overhead.
        tm = min(tm, _round_up((m_pad + 1) // 2, 8))
    return tm


def _tiled_matmul_call(kernel, x, w, b, out_dtype):
    """Row-tiled, pipelined matmul: x (M,K) bf16, w (K,N) bf16, b (1,N) f32."""
    M, K = x.shape
    Kw, N = w.shape
    assert K == Kw and b.shape == (1, N), (x.shape, w.shape, b.shape)
    # Pad rows up to a sublane multiple (also fixes the M=2 FC case).
    m_pad = _round_up(max(M, 8), 8)
    if m_pad != M:
        x = jnp.pad(x, ((0, m_pad - M), (0, 0)))
    tm = _pick_tm(m_pad)
    grid = (pl.cdiv(m_pad, tm),)
    out = pl.pallas_call(
        kernel,
        out_shape=jax.ShapeDtypeStruct((m_pad, N), out_dtype),
        grid_spec=pltpu.PrefetchScalarGridSpec(
            num_scalar_prefetch=0,
            grid=grid,
            in_specs=[
                pl.BlockSpec((tm, K), lambda i: (i, 0)),   # pipelined row tile
                pl.BlockSpec((K, N), lambda i: (0, 0)),    # weight stays resident
                pl.BlockSpec((1, N), lambda i: (0, 0)),    # bias stays resident
                # TODO(synk): pipeline_mode=pl.Buffered(1) on w/b would halve
                # their double-buffer footprint; skipped because VMEM is far
                # below the limit at these sizes.
            ],
            out_specs=pl.BlockSpec((tm, N), lambda i: (i, 0)),
        ),
        compiler_params=pltpu.CompilerParams(
            dimension_semantics=("parallel",),     # megacore-shardable on v7x
            vmem_limit_bytes=32 * 1024 * 1024,     # safe on v5e/v6e/v7x
        ),
    )(x, w, b)
    return out[:M] if m_pad != M else out


# ----------------------------------------------------------------------------
# Glue: im2col (NHWC) and layer wrappers
# ----------------------------------------------------------------------------
def im2col_nhwc(x, ksize, stride, pad):
    """x: (N, H, W, C) -> (N*OH*OW, ksize*ksize*C), patch order (kh, kw, c)."""
    N, H, W, C = x.shape
    xp = jnp.pad(x, ((0, 0), (pad, pad), (pad, pad), (0, 0)))
    OH = (H + 2 * pad - ksize) // stride + 1
    OW = (W + 2 * pad - ksize) // stride + 1
    taps = []
    for kh in range(ksize):
        for kw in range(ksize):
            taps.append(xp[:, kh:kh + stride * OH:stride,
                           kw:kw + stride * OW:stride, :])
    p = jnp.stack(taps, axis=3)                      # (N, OH, OW, k*k, C)
    return p.reshape(N * OH * OW, ksize * ksize * C), (N, OH, OW)
# TODO(synk): fuse patch extraction into the conv kernel (halo'd row tiles +
# in-kernel (kh,kw) taps) to remove the ~9x im2col HBM traffic, and fuse
# conv3 -> linear+softmax (or the whole net) into one pallas_call to cut
# launch latency; kept in plain JAX here to stay on the proven-lowering path.


def conv2d_relu(x_nhwc, layer, stride):
    f, cout = layer["f"], layer["cout"]
    patches, (N, OH, OW) = im2col_nhwc(x_nhwc, layer["ksize"], stride, layer["pad"])
    M, K = patches.shape
    m_pad = _round_up(M, f)
    if m_pad != M:                                   # static; only partial batches
        patches = jnp.pad(patches, ((0, m_pad - M), (0, 0)))
    x_blk = patches.reshape(m_pad // f, f * K)       # free row-major reshape
    if layer["k_pad"] != layer["k_blk"]:             # lane-align contraction dim
        x_blk = jnp.pad(x_blk, ((0, 0), (0, layer["k_pad"] - layer["k_blk"])))
    out_blk = _tiled_matmul_call(_matmul_bias_relu_kernel, x_blk,
                                 layer["w_blk"], layer["b_blk"], jnp.bfloat16)
    out = out_blk.reshape(m_pad, cout)[:M]           # free reinterpretation
    return out.reshape(N, OH, OW, cout)


def linear_softmax(flat_bf16, fc):
    k = flat_bf16.shape[1]
    if fc["k_pad"] != k:                             # lane-align contraction dim
        flat_bf16 = jnp.pad(flat_bf16, ((0, 0), (0, fc["k_pad"] - k)))
    probs = _tiled_matmul_call(_matmul_bias_softmax_kernel, flat_bf16,
                               fc["w_pad"], fc["b_pad"], jnp.float32)
    return probs[:, :fc["num_classes"]]


def netv1_forward(params, x_nchw):
    # x_nchw: (N, 1, 28, 28), same input layout as the PyTorch module.
    x = jnp.transpose(x_nchw, (0, 2, 3, 1)).astype(jnp.bfloat16)   # NHWC, bf16
    h = conv2d_relu(x, params["conv1"], stride=1)    # (N, 28, 28, 16)
    h = conv2d_relu(h, params["conv2"], stride=2)    # (N, 14, 14, 32)
    h = conv2d_relu(h, params["conv3"], stride=2)    # (N,  7,  7, 64)
    # NHWC flatten; the classifier weight was permuted at init to match, so no
    # runtime NHWC->NCHW transpose is needed.
    flat = h.reshape(h.shape[0], -1)                 # (N, 3136) bf16
    return linear_softmax(flat, params["fc"])        # (N, 10) f32


# ----------------------------------------------------------------------------
# Parameters: raw PyTorch layout + one-time kernel layout preparation
# ----------------------------------------------------------------------------
def init_raw_params(key):
    """PyTorch-layout f32 parameters (Conv: OIHW, Linear: (out, in))."""
    ks = jax.random.split(key, 8)

    def conv_w(k, cout, cin, kh, kw):
        fan_in = cin * kh * kw
        return jax.random.normal(k, (cout, cin, kh, kw), jnp.float32) * fan_in ** -0.5

    return {
        "w1": conv_w(ks[0], 16, 1, 3, 3),
        "b1": jax.random.normal(ks[1], (16,), jnp.float32) * 0.01,
        "w2": conv_w(ks[2], 32, 16, 3, 3),
        "b2": jax.random.normal(ks[3], (32,), jnp.float32) * 0.01,
        "w3": conv_w(ks[4], 64, 32, 3, 3),
        "b3": jax.random.normal(ks[5], (64,), jnp.float32) * 0.01,
        "wl": jax.random.normal(ks[6], (10, 64 * 7 * 7), jnp.float32) * (64 * 7 * 7) ** -0.5,
        "bl": jax.random.normal(ks[7], (10,), jnp.float32) * 0.01,
    }


def prepare_params(raw, feat_chw=(64, 7, 7)):
    """One-time layout work (hoisted out of the forward pass)."""
    slab = chip_config()["slab"]

    def conv_layer(w_oihw, b):
        cout, cin, kh, kw = w_oihw.shape
        # (kh, kw, cin, cout) matches the im2col (kh, kw, c) patch order.
        w_mat = jnp.transpose(w_oihw, (2, 3, 1, 0)).reshape(kh * kw * cin, cout)
        f = max(1, slab // cout)                     # output rows per slab
        k_blk = f * kh * kw * cin
        k_pad = _round_up(k_blk, LANE)               # lane-aligned K
        w_blk = jnp.kron(jnp.eye(f, dtype=w_mat.dtype), w_mat)
        w_blk = jnp.pad(w_blk, ((0, k_pad - k_blk), (0, 0))).astype(jnp.bfloat16)
        b_blk = jnp.tile(b, f).reshape(1, f * cout).astype(jnp.float32)
        return {"w_blk": w_blk, "b_blk": b_blk, "f": f, "cout": cout,
                "ksize": kh, "pad": 1, "k_blk": k_blk, "k_pad": k_pad}

    C, H, W = feat_chw
    ncls, in_feat = raw["wl"].shape
    # Permute classifier columns from NCHW flatten order to NHWC flatten order.
    wl_nhwc = jnp.transpose(raw["wl"].reshape(ncls, C, H, W),
                            (2, 3, 1, 0)).reshape(in_feat, ncls)
    k_fc = _round_up(in_feat, LANE)                  # 3136 -> 3200
    w_pad = jnp.zeros((k_fc, LANE), jnp.float32).at[:in_feat, :ncls].set(wl_nhwc)
    w_pad = w_pad.astype(jnp.bfloat16)               # lane-dense (3200, 128)
    # Padded-lane bias stays f32 at -1e30 so those logits exp() cleanly to 0.
    b_pad = jnp.full((1, LANE), -1e30, jnp.float32).at[0, :ncls].set(raw["bl"])

    return {
        "conv1": conv_layer(raw["w1"], raw["b1"]),
        "conv2": conv_layer(raw["w2"], raw["b2"]),
        "conv3": conv_layer(raw["w3"], raw["b3"]),
        "fc": {"w_pad": w_pad, "b_pad": b_pad, "num_classes": ncls, "k_pad": k_fc},
    }


# ----------------------------------------------------------------------------
# Pure-JAX f32 reference with exact PyTorch semantics (for validation)
# ----------------------------------------------------------------------------
def netv1_reference(raw, x_nchw):
    h = x_nchw
    for w_name, b_name, stride in (("w1", "b1", 1), ("w2", "b2", 2), ("w3", "b3", 2)):
        h = jax.lax.conv_general_dilated(
            h, raw[w_name], window_strides=(stride, stride),
            padding=((1, 1), (1, 1)),
            dimension_numbers=("NCHW", "OIHW", "NCHW"))
        h = jnp.maximum(h + raw[b_name].reshape(1, -1, 1, 1), 0.0)
    flat = h.reshape(h.shape[0], -1)                 # NCHW flatten, like PyTorch
    logits = flat @ raw["wl"].T + raw["bl"]
    return jax.nn.softmax(logits, axis=1)


if __name__ == "__main__":
    key = jax.random.PRNGKey(0)
    k_param, k_x = jax.random.split(key)
    raw = init_raw_params(k_param)
    params = prepare_params(raw)

    # Shape implied by the module's 64*7*7 flatten: (N, 1, 28, 28); batch=2.
    x = jax.random.normal(k_x, (2, 1, 28, 28), jnp.float32)

    fwd = jax.jit(functools.partial(netv1_forward, params))
    out = jax.block_until_ready(fwd(x))

    assert out.shape == (2, 10), out.shape
    assert bool(jnp.all(jnp.isfinite(out)))
    # Exact softmax normalization now -> tight row-sum tolerance.
    assert jnp.allclose(jnp.sum(out, axis=1), 1.0, atol=1e-3)

    # Validate against the pure-JAX f32 reference (bf16 MXU path -> loose tol).
    ref = netv1_reference(raw, x)
    assert jnp.allclose(out, ref, atol=2e-2, rtol=2e-2), float(
        jnp.max(jnp.abs(out - ref)))

    print("KERNEL_OK")
</pallas_src>

<mosaic_0001>
module attributes {stable_mosaic.version = 11 : i64} {
  func.func @_matmul_bias_relu_kernel(%arg0: i32, %arg1: memref<200x128xbf16, #tpu.memory_space<vmem>>, %arg2: memref<128x128xbf16, #tpu.memory_space<vmem>>, %arg3: memref<1x128xf32, #tpu.memory_space<vmem>>, %arg4: memref<200x128xbf16, #tpu.memory_space<vmem>>) attributes {dimension_semantics = [#tpu.dimension_semantics<parallel>], iteration_bounds = array<i64: 1>, scalar_prefetch = 0 : i64, scratch_operands = 0 : i64, tpu.core_type = #tpu.core_type<tc>, window_params = [{transform_indices = @transform_0, window_bounds = array<i64: 200, 128>}, {pipeline_mode = #tpu.pipeline_mode<synchronous>, transform_indices = @transform_1, window_bounds = array<i64: 128, 128>}, {pipeline_mode = #tpu.pipeline_mode<synchronous>, transform_indices = @transform_2, window_bounds = array<i64: 1, 128>}, {transform_indices = @transform_3, window_bounds = array<i64: 200, 128>}]} {
    %c0 = arith.constant 0 : index
    %c0_0 = arith.constant 0 : index
    %0 = vector.load %arg1[%c0, %c0_0] : memref<200x128xbf16, #tpu.memory_space<vmem>>, vector<200x128xbf16>
    %c0_1 = arith.constant 0 : index
    %c0_2 = arith.constant 0 : index
    %1 = vector.load %arg2[%c0_1, %c0_2] : memref<128x128xbf16, #tpu.memory_space<vmem>>, vector<128x128xbf16>
    %cst = arith.constant dense<0.000000e+00> : vector<200x128xf32>
    %2 = tpu.matmul %0, %1, %cst {dimension_numbers = #tpu.dot_dimension_numbers<[1], [0], [0], [1], [0, 0, 1, 1], [], []>} : vector<200x128xbf16>, vector<128x128xbf16>, vector<200x128xf32> -> vector<200x128xf32>
    %c0_3 = arith.constant 0 : index
    %c0_4 = arith.constant 0 : index
    %3 = vector.load %arg3[%c0_3, %c0_4] : memref<1x128xf32, #tpu.memory_space<vmem>>, vector<1x128xf32>
    %4 = vector.broadcast %3 : vector<1x128xf32> to vector<200x128xf32>
    %5 = arith.addf %2, %4 : vector<200x128xf32>
    %cst_5 = arith.constant 0.000000e+00 : f32
    %6 = vector.broadcast %cst_5 : f32 to vector<200x128xf32>
    %7 = arith.maximumf %5, %6 : vector<200x128xf32>
    %8 = arith.truncf %7 : vector<200x128xf32> to vector<200x128xbf16>
    %c0_6 = arith.constant 0 : index
    %c0_7 = arith.constant 0 : index
    %9 = vector.load %arg4[%c0_6, %c0_7] : memref<200x128xbf16, #tpu.memory_space<vmem>>, vector<200x128xbf16>
    tpu.vector_store %arg4[%c0_6, %c0_7], %8 {strides = array<i32>} : memref<200x128xbf16, #tpu.memory_space<vmem>>, vector<200x128xbf16>,
    return
  }
  func.func @transform_0(%arg0: i32) -> (i32, i32) {
    %c0_i32 = arith.constant 0 : i32
    %c0_i32_0 = arith.constant 0 : i32
    return %arg0, %c0_i32 : i32, i32
  }
  func.func @transform_1(%arg0: i32) -> (i32, i32) {
    %c0_i32 = arith.constant 0 : i32
    %c0_i32_0 = arith.constant 0 : i32
    %c0_i32_1 = arith.constant 0 : i32
    return %c0_i32, %c0_i32_0 : i32, i32
  }
  func.func @transform_2(%arg0: i32) -> (i32, i32) {
    %c0_i32 = arith.constant 0 : i32
    %c0_i32_0 = arith.constant 0 : i32
    %c0_i32_1 = arith.constant 0 : i32
    return %c0_i32, %c0_i32_0 : i32, i32
  }
  func.func @transform_3(%arg0: i32) -> (i32, i32) {
    %c0_i32 = arith.constant 0 : i32
    %c0_i32_0 = arith.constant 0 : i32
    return %arg0, %c0_i32 : i32, i32
  }
}

module attributes {stable_mosaic.version = 11 : i64} {
  func.func @_matmul_bias_relu_kernel(%arg0: i32, %arg1: memref<104x640xbf16, #tpu.memory_space<vmem>>, %arg2: memref<640x128xbf16, #tpu.memory_space<vmem>>, %arg3: memref<1x128xf32, #tpu.memory_space<vmem>>, %arg4: memref<104x128xbf16, #tpu.memory_space<vmem>>) attributes {dimension_semantics = [#tpu.dimension_semantics<parallel>], iteration_bounds = array<i64: 1>, scalar_prefetch = 0 : i64, scratch_operands = 0 : i64, tpu.core_type = #tpu.core_type<tc>, window_params = [{transform_indices = @transform_0, window_bounds = array<i64: 104, 640>}, {pipeline_mode = #tpu.pipeline_mode<synchronous>, transform_indices = @transform_1, window_bounds = array<i64: 640, 128>}, {pipeline_mode = #tpu.pipeline_mode<synchronous>, transform_indices = @transform_2, window_bounds = array<i64: 1, 128>}, {transform_indices = @transform_3, window_bounds = array<i64: 104, 128>}]} {
    %c0 = arith.constant 0 : index
    %c0_0 = arith.constant 0 : index
    %0 = vector.load %arg1[%c0, %c0_0] : memref<104x640xbf16, #tpu.memory_space<vmem>>, vector<104x640xbf16>
    %c0_1 = arith.constant 0 : index
    %c0_2 = arith.constant 0 : index
    %1 = vector.load %arg2[%c0_1, %c0_2] : memref<640x128xbf16, #tpu.memory_space<vmem>>, vector<640x128xbf16>
    %cst = arith.constant dense<0.000000e+00> : vector<104x128xf32>
    %2 = tpu.matmul %0, %1, %cst {dimension_numbers = #tpu.dot_dimension_numbers<[1], [0], [0], [1], [0, 0, 1, 1], [], []>} : vector<104x640xbf16>, vector<640x128xbf16>, vector<104x128xf32> -> vector<104x128xf32>
    %c0_3 = arith.constant 0 : index
    %c0_4 = arith.constant 0 : index
    %3 = vector.load %arg3[%c0_3, %c0_4] : memref<1x128xf32, #tpu.memory_space<vmem>>, vector<1x128xf32>
    %4 = vector.broadcast %3 : vector<1x128xf32> to vector<104x128xf32>
    %5 = arith.addf %2, %4 : vector<104x128xf32>
    %cst_5 = arith.constant 0.000000e+00 : f32
    %6 = vector.broadcast %cst_5 : f32 to vector<104x128xf32>
    %7 = arith.maximumf %5, %6 : vector<104x128xf32>
    %8 = arith.truncf %7 : vector<104x128xf32> to vector<104x128xbf16>
    %c0_6 = arith.constant 0 : index
    %c0_7 = arith.constant 0 : index
    %9 = vector.load %arg4[%c0_6, %c0_7] : memref<104x128xbf16, #tpu.memory_space<vmem>>, vector<104x128xbf16>
    tpu.vector_store %arg4[%c0_6, %c0_7], %8 {strides = array<i32>} : memref<104x128xbf16, #tpu.memory_space<vmem>>, vector<104x128xbf16>,
    return
  }
  func.func @transform_0(%arg0: i32) -> (i32, i32) {
    %c0_i32 = arith.constant 0 : i32
    %c0_i32_0 = arith.constant 0 : i32
    return %arg0, %c0_i32 : i32, i32
  }
  func.func @transform_1(%arg0: i32) -> (i32, i32) {
    %c0_i32 = arith.constant 0 : i32
    %c0_i32_0 = arith.constant 0 : i32
    %c0_i32_1 = arith.constant 0 : i32
    return %c0_i32, %c0_i32_0 : i32, i32
  }
  func.func @transform_2(%arg0: i32) -> (i32, i32) {
    %c0_i32 = arith.constant 0 : i32
    %c0_i32_0 = arith.constant 0 : i32
    %c0_i32_1 = arith.constant 0 : i32
    return %c0_i32, %c0_i32_0 : i32, i32
  }
  func.func @transform_3(%arg0: i32) -> (i32, i32) {
    %c0_i32 = arith.constant 0 : i32
    %c0_i32_0 = arith.constant 0 : i32
    return %arg0, %c0_i32 : i32, i32
  }
}

module attributes {stable_mosaic.version = 11 : i64} {
  func.func @_matmul_bias_relu_kernel(%arg0: i32, %arg1: memref<56x640xbf16, #tpu.memory_space<vmem>>, %arg2: memref<640x128xbf16, #tpu.memory_space<vmem>>, %arg3: memref<1x128xf32, #tpu.memory_space<vmem>>, %arg4: memref<56x128xbf16, #tpu.memory_space<vmem>>) attributes {dimension_semantics = [#tpu.dimension_semantics<parallel>], iteration_bounds = array<i64: 1>, scalar_prefetch = 0 : i64, scratch_operands = 0 : i64, tpu.core_type = #tpu.core_type<tc>, window_params = [{transform_indices = @transform_0, window_bounds = array<i64: 56, 640>}, {pipeline_mode = #tpu.pipeline_mode<synchronous>, transform_indices = @transform_1, window_bounds = array<i64: 640, 128>}, {pipeline_mode = #tpu.pipeline_mode<synchronous>, transform_indices = @transform_2, window_bounds = array<i64: 1, 128>}, {transform_indices = @transform_3, window_bounds = array<i64: 56, 128>}]} {
    %c0 = arith.constant 0 : index
    %c0_0 = arith.constant 0 : index
    %0 = vector.load %arg1[%c0, %c0_0] : memref<56x640xbf16, #tpu.memory_space<vmem>>, vector<56x640xbf16>
    %c0_1 = arith.constant 0 : index
    %c0_2 = arith.constant 0 : index
    %1 = vector.load %arg2[%c0_1, %c0_2] : memref<640x128xbf16, #tpu.memory_space<vmem>>, vector<640x128xbf16>
    %cst = arith.constant dense<0.000000e+00> : vector<56x128xf32>
    %2 = tpu.matmul %0, %1, %cst {dimension_numbers = #tpu.dot_dimension_numbers<[1], [0], [0], [1], [0, 0, 1, 1], [], []>} : vector<56x640xbf16>, vector<640x128xbf16>, vector<56x128xf32> -> vector<56x128xf32>
    %c0_3 = arith.constant 0 : index
    %c0_4 = arith.constant 0 : index
    %3 = vector.load %arg3[%c0_3, %c0_4] : memref<1x128xf32, #tpu.memory_space<vmem>>, vector<1x128xf32>
    %4 = vector.broadcast %3 : vector<1x128xf32> to vector<56x128xf32>
    %5 = arith.addf %2, %4 : vector<56x128xf32>
    %cst_5 = arith.constant 0.000000e+00 : f32
    %6 = vector.broadcast %cst_5 : f32 to vector<56x128xf32>
    %7 = arith.maximumf %5, %6 : vector<56x128xf32>
    %8 = arith.truncf %7 : vector<56x128xf32> to vector<56x128xbf16>
    %c0_6 = arith.constant 0 : index
    %c0_7 = arith.constant 0 : index
    %9 = vector.load %arg4[%c0_6, %c0_7] : memref<56x128xbf16, #tpu.memory_space<vmem>>, vector<56x128xbf16>
    tpu.vector_store %arg4[%c0_6, %c0_7], %8 {strides = array<i32>} : memref<56x128xbf16, #tpu.memory_space<vmem>>, vector<56x128xbf16>,
    return
  }
  func.func @transform_0(%arg0: i32) -> (i32, i32) {
    %c0_i32 = arith.constant 0 : i32
    %c0_i32_0 = arith.constant 0 : i32
    return %arg0, %c0_i32 : i32, i32
  }
  func.func @transform_1(%arg0: i32) -> (i32, i32) {
    %c0_i32 = arith.constant 0 : i32
    %c0_i32_0 = arith.constant 0 : i32
    %c0_i32_1 = arith.constant 0 : i32
    return %c0_i32, %c0_i32_0 : i32, i32
  }
  func.func @transform_2(%arg0: i32) -> (i32, i32) {
    %c0_i32 = arith.constant 0 : i32
    %c0_i32_0 = arith.constant 0 : i32
    %c0_i32_1 = arith.constant 0 : i32
    return %c0_i32, %c0_i32_0 : i32, i32
  }
  func.func @transform_3(%arg0: i32) -> (i32, i32) {
    %c0_i32 = arith.constant 0 : i32
    %c0_i32_0 = arith.constant 0 : i32
    return %arg0, %c0_i32 : i32, i32
  }
}

module attributes {stable_mosaic.version = 11 : i64} {
  func.func @_matmul_bias_softmax_kernel(%arg0: i32, %arg1: memref<8x3200xbf16, #tpu.memory_space<vmem>>, %arg2: memref<3200x128xbf16, #tpu.memory_space<vmem>>, %arg3: memref<1x128xf32, #tpu.memory_space<vmem>>, %arg4: memref<8x128xf32, #tpu.memory_space<vmem>>) attributes {dimension_semantics = [#tpu.dimension_semantics<parallel>], iteration_bounds = array<i64: 1>, scalar_prefetch = 0 : i64, scratch_operands = 0 : i64, tpu.core_type = #tpu.core_type<tc>, window_params = [{transform_indices = @transform_0, window_bounds = array<i64: 8, 3200>}, {pipeline_mode = #tpu.pipeline_mode<synchronous>, transform_indices = @transform_1, window_bounds = array<i64: 3200, 128>}, {pipeline_mode = #tpu.pipeline_mode<synchronous>, transform_indices = @transform_2, window_bounds = array<i64: 1, 128>}, {transform_indices = @transform_3, window_bounds = array<i64: 8, 128>}]} {
    %c0 = arith.constant 0 : index
    %c0_0 = arith.constant 0 : index
    %0 = vector.load %arg1[%c0, %c0_0] : memref<8x3200xbf16, #tpu.memory_space<vmem>>, vector<8x3200xbf16>
    %c0_1 = arith.constant 0 : index
    %c0_2 = arith.constant 0 : index
    %1 = vector.load %arg2[%c0_1, %c0_2] : memref<3200x128xbf16, #tpu.memory_space<vmem>>, vector<3200x128xbf16>
    %cst = arith.constant dense<0.000000e+00> : vector<8x128xf32>
    %2 = tpu.matmul %0, %1, %cst {dimension_numbers = #tpu.dot_dimension_numbers<[1], [0], [0], [1], [0, 0, 1, 1], [], []>} : vector<8x3200xbf16>, vector<3200x128xbf16>, vector<8x128xf32> -> vector<8x128xf32>
    %c0_3 = arith.constant 0 : index
    %c0_4 = arith.constant 0 : index
    %3 = vector.load %arg3[%c0_3, %c0_4] : memref<1x128xf32, #tpu.memory_space<vmem>>, vector<1x128xf32>
    %4 = vector.broadcast %3 : vector<1x128xf32> to vector<8x128xf32>
    %5 = arith.addf %2, %4 : vector<8x128xf32>
    %cst_5 = arith.constant dense<0xFF800000> : vector<8xf32>
    %6 = vector.multi_reduction <maximumf>, %5, %cst_5 [1] : vector<8x128xf32> to vector<8xf32>
    %7 = vector.shape_cast %6 : vector<8xf32> to vector<8x1xf32>
    %8 = vector.broadcast %7 : vector<8x1xf32> to vector<8x128xf32>
    %9 = arith.subf %5, %8 : vector<8x128xf32>
    %10 = math.exp %9 : vector<8x128xf32>
    %cst_6 = arith.constant dense<0.000000e+00> : vector<8xf32>
    %11 = vector.multi_reduction <add>, %10, %cst_6 [1] : vector<8x128xf32> to vector<8xf32>
    %12 = vector.shape_cast %11 : vector<8xf32> to vector<8x1xf32>
    %13 = vector.broadcast %12 : vector<8x1xf32> to vector<8x128xf32>
    %14 = arith.divf %10, %13 : vector<8x128xf32>
    %c0_7 = arith.constant 0 : index
    %c0_8 = arith.constant 0 : index
    %15 = vector.load %arg4[%c0_7, %c0_8] : memref<8x128xf32, #tpu.memory_space<vmem>>, vector<8x128xf32>
    tpu.vector_store %arg4[%c0_7, %c0_8], %14 {strides = array<i32>} : memref<8x128xf32, #tpu.memory_space<vmem>>, vector<8x128xf32>,
    return
  }
  func.func @transform_0(%arg0: i32) -> (i32, i32) {
    %c0_i32 = arith.constant 0 : i32
    %c0_i32_0 = arith.constant 0 : i32
    return %arg0, %c0_i32 : i32, i32
  }
  func.func @transform_1(%arg0: i32) -> (i32, i32) {
    %c0_i32 = arith.constant 0 : i32
    %c0_i32_0 = arith.constant 0 : i32
    %c0_i32_1 = arith.constant 0 : i32
    return %c0_i32, %c0_i32_0 : i32, i32
  }
  func.func @transform_2(%arg0: i32) -> (i32, i32) {
    %c0_i32 = arith.constant 0 : i32
    %c0_i32_0 = arith.constant 0 : i32
    %c0_i32_1 = arith.constant 0 : i32
    return %c0_i32, %c0_i32_0 : i32, i32
  }
  func.func @transform_3(%arg0: i32) -> (i32, i32) {
    %c0_i32 = arith.constant 0 : i32
    %c0_i32_0 = arith.constant 0 : i32
    return %arg0, %c0_i32 : i32, i32
  }
}

</mosaic_0001>

<bundles_post_ra>
// kernel: netv1_forward.4
= control target key start
LH: loop header
LB: loop body
LE: loop exit
PB: predicated region body
PF: predicated region fallthrough
CT: control target
= control target key end

     0   :  { %8 = vsyncpa [#allocation3], 0  ;;  %s785_s12 = smov [#allocation2]   ;;  %s982_s0 = inlined_call_operand.vmem [shape: bf16[200,128], index: 0, kind: input, shape index: {}]   ;;  %s983_s1 = inlined_call_operand.vmem [shape: bf16[128,128], index: 1, kind: input, shape index: {}]   ;;  %s984_s2 = inlined_call_operand.hbm [shape: f32[1,128], index: 2, kind: input, shape index: {}]   ;;  %s985_s3 = inlined_call_operand.vmem [shape: bf16[200,128], index: 3, kind: output, shape index: {}]  }
   0x1   :  { %s19_s13 = sshll.u32 %s785_s12, 4  ;;  %s20_s13 = int_to_ptr.vmem [resolvable:$true] %s19_s13 }
   0x2   :  { %s771_s14 = scalar_lea.vmem %s20_s13, 16  ;;  %s775_s15 = scalar_lea.vmem %s20_s13, 32 }
   0x3   :  { %p772_p0 = scmp.ne.s32.totalorder %s20_s13, %s771_s14  ;;  %p776_p1 = scmp.lt.s32.totalorder %s20_s13, %s20_s13 }
   0x4   :  { %p777_p2 = scmp.lt.s32.totalorder %s775_s15, %s771_s14 }
   0x6   :  { %p778_p3 = por %p777_p2, %p776_p1 }
   0x8   :  { %p779_p4 = pnand %p778_p3, %p772_p0 }
   0xa   :  { %782 = shalt.err (!%p779_p4)
}
   0xb   :  { %22 = dma.hbm_to_vmem [thread:$0]  %s984_s2, 16, %s20_s13, [#allocation3]  }
   0xc   :  { %783 = dma.done.wait [#allocation3], 16  }
   0xd   :  { %784 = vsyncadd [#allocation3], 4294967280  ;;  %v786_v0 = vmov 0.0   ;;  %vm787_vm0 = vmmov 0   ;;  %v742_v1 = vld [vmem:[%s983_s1 + $0x38] sm:$0xff]   ;;  %v743_v2 = vld [vmem:[%s983_s1 + $0x30] sm:$0xff]  }
   0xe   :  { %655 = vmatprep.subr.bf16.mxu0 %v786_v0  ;;  %723 = vmatprep.subr.bf16.mxu1 %v786_v0  ;;  %v744_v3 = vld [vmem:[%s983_s1 + $0x28] sm:$0xff]   ;;  %v745_v4 = vld [vmem:[%s983_s1 + $0x20] sm:$0xff]   ;;  %v746_v5 = vld [vmem:[%s983_s1 + $0x18] sm:$0xff]  }
   0xf   :  { %671 = vmatprep.mubr.msk.bf16.mxu0 %vm787_vm0, %v786_v0  ;;  %699 = vmatprep.mubr.msk.bf16.mxu1 %vm787_vm0, %v786_v0  ;;  %v747_v6 = vld [vmem:[%s983_s1 + $0x10] sm:$0xff]   ;;  %v748_v7 = vld [vmem:[%s983_s1 + $0x8] sm:$0xff]   ;;  %v749_v8 = vld [vmem:[%s983_s1] sm:$0xff]  }
  0x10   :  { %656 = vmatpush3.bf16.msra.mxu0 %v742_v1  ;;  %731 = vmatpush3.bf16.msra.mxu1 %v742_v1  ;;  %v750_v9 = vld [vmem:[%s982_s0] sm:$0xff]   ;;  %v751_v10 = vld [vmem:[%s982_s0 + $0x38] sm:$0xff]   ;;  %v752_v11 = vld [vmem:[%s982_s0 + $0x8] sm:$0xff]  }
  0x11   :  { %657 = vmatprep.subr.bf16.mxu0 %v786_v0  ;;  %724 = vmatprep.subr.bf16.mxu1 %v786_v0  ;;  %v753_v12 = vld [vmem:[%s982_s0 + $0x40] sm:$0xff]   ;;  %v754_v13 = vld [vmem:[%s982_s0 + $0x10] sm:$0xff]   ;;  %v755_v14 = vld [vmem:[%s982_s0 + $0x48] sm:$0xff]  }
  0x12   :  { %v756_v15 = vld [vmem:[%s982_s0 + $0x18] sm:$0xff]   ;;  %v757_v16 = vld [vmem:[%s982_s0 + $0x50] sm:$0xff]   ;;  %v758_v17 = vld [vmem:[%s982_s0 + $0x20] sm:$0xff]  }
  0x13   :  { %v759_v18 = vld [vmem:[%s982_s0 + $0x58] sm:$0xff]   ;;  %v760_v19 = vld [vmem:[%s982_s0 + $0x28] sm:$0xff]   ;;  %v761_v20 = vld [vmem:[%s982_s0 + $0x60] ss:$0 sps:$4 sm:$0xff]  }
  0x14   :  { %658 = vmatpush3.bf16.msra.mxu0 %v743_v2  ;;  %732 = vmatpush3.bf16.msra.mxu1 %v743_v2  ;;  %v762_v21 = vld [vmem:[%s982_s0 + $0x30] sm:$0xff]   ;;  %v916_v22 = vld [vmem:[#allocation2] ss:$0 sm:$0xff] }
  0x15   :  { %659 = vmatprep.subr.bf16.mxu0 %v786_v0  ;;  %725 = vmatprep.subr.bf16.mxu1 %v786_v0 }
  0x18   :  { %660 = vmatpush3.bf16.msra.mxu0 %v744_v3  ;;  %733 = vmatpush3.bf16.msra.mxu1 %v744_v3 }
  0x19   :  { %661 = vmatprep.subr.bf16.mxu0 %v786_v0  ;;  %726 = vmatprep.subr.bf16.mxu1 %v786_v0 }
  0x1c   :  { %662 = vmatpush3.bf16.msra.mxu0 %v745_v4  ;;  %734 = vmatpush3.bf16.msra.mxu1 %v745_v4 }
  0x1d   :  { %663 = vmatprep.subr.bf16.mxu0 %v786_v0  ;;  %727 = vmatprep.subr.bf16.mxu1 %v786_v0 }
  0x20   :  { %664 = vmatpush3.bf16.msra.mxu0 %v746_v5  ;;  %735 = vmatpush3.bf16.msra.mxu1 %v746_v5 }
  0x21   :  { %665 = vmatprep.subr.bf16.mxu0 %v786_v0  ;;  %728 = vmatprep.subr.bf16.mxu1 %v786_v0 }
  0x24   :  { %666 = vmatpush3.bf16.msra.mxu0 %v747_v6  ;;  %736 = vmatpush3.bf16.msra.mxu1 %v747_v6 }
  0x25   :  { %667 = vmatprep.subr.bf16.mxu0 %v786_v0  ;;  %729 = vmatprep.subr.bf16.mxu1 %v786_v0 }
  0x28   :  { %668 = vmatpush3.bf16.msra.mxu0 %v748_v7  ;;  %737 = vmatpush3.bf16.msra.mxu1 %v748_v7 }
  0x29   :  { %669 = vmatprep.subr.bf16.mxu0 %v786_v0  ;;  %730 = vmatprep.subr.bf16.mxu1 %v786_v0 }
  0x2c   :  { %670 = vmatpush3.bf16.msra.mxu0 %v749_v8  ;;  %738 = vmatpush3.bf16.msra.mxu1 %v749_v8 }
  0x2f   :  { %672 = vmatmul.mubr.bf16.vlgmr.msra.gmra.mxu0 %v750_v9  ;;  %700 = vmatmul.mubr.bf16.vlgmr.msra.gmra.mxu1 %v751_v10 }
  0x30   :  { %675 = vmatprep.mubr.msk.bf16.mxu0 %vm787_vm0, %v786_v0  ;;  %703 = vmatprep.mubr.msk.bf16.mxu1 %vm787_vm0, %v786_v0 }
  0x37   :  { %676 = vmatmul.mubr.bf16.gmra.mxu0 %v752_v11  ;;  %704 = vmatmul.mubr.bf16.gmra.mxu1 %v753_v12 }
  0x38   :  { %679 = vmatprep.mubr.msk.bf16.mxu0 %vm787_vm0, %v786_v0  ;;  %707 = vmatprep.mubr.msk.bf16.mxu1 %vm787_vm0, %v786_v0 }
  0x3f   :  { %680 = vmatmul.mubr.bf16.gmra.mxu0 %v754_v13  ;;  %708 = vmatmul.mubr.bf16.gmra.mxu1 %v755_v14 }
  0x40   :  { %683 = vmatprep.mubr.msk.bf16.mxu0 %vm787_vm0, %v786_v0  ;;  %711 = vmatprep.mubr.msk.bf16.mxu1 %vm787_vm0, %v786_v0 }
  0x47   :  { %684 = vmatmul.mubr.bf16.gmra.mxu0 %v756_v15  ;;  %712 = vmatmul.mubr.bf16.gmra.mxu1 %v757_v16 }
  0x48   :  { %687 = vmatprep.mubr.msk.bf16.mxu0 %vm787_vm0, %v786_v0  ;;  %715 = vmatprep.mubr.msk.bf16.mxu1 %vm787_vm0, %v786_v0 }
  0x4f   :  { %688 = vmatmul.mubr.bf16.gmra.mxu0 %v758_v17  ;;  %716 = vmatmul.mubr.bf16.gmra.mxu1 %v759_v18 }
  0x50   :  { %691 = vmatprep.mubr.msk.bf16.mxu0 %vm787_vm0, %v786_v0  ;;  %719 = vmatprep.mubr.msk.bf16.mxu1 %vm787_vm0, %v786_v0 }
  0x57   :  { %692 = vmatmul.mubr.bf16.gmra.mxu0 %v760_v19  ;;  %720 = vmatmul.mubr.bf16.gmra.mxu1 %v761_v20 }
  0x58   :  { %695 = vmatprep.mubr.msk.bf16.mxu0 %vm787_vm0, %v786_v0 }
  0x5f   :  { %696 = vmatmul.mubr.bf16.gmra.mxu0 %v762_v21 }
  0xef   :  { %v233_v23 = vpop.f32.mrf.mxu0  ;;  %v289_v24 = vpop.f32.mrf.mxu1 }
  0xf0   :  { %v290_v25 = vadd.f32 %v916_v22, %v289_v24  ;;  %v234_v28 = vadd.f32 %v916_v22, %v233_v23 }
  0xf1   :  { %v673_v26 = vpop.f32.mrf.mxu0  ;;  %v701_v27 = vpop.f32.mrf.mxu1 }
  0xf2   :  { %v349_v32 = vmax.f32 %v290_v25, 0.0  ;;  %v335_v36 = vmax.f32 %v234_v28, 0.0 }
  0xf3   :  { %v236_v29 = vpop.f32.mrf.mxu0  ;;  %v292_v30 = vpop.f32.mrf.mxu1 }
  0xf4   :  { %v237_v31 = vadd.f32 %v916_v22, %v236_v29  ;;  %v293_v33 = vadd.f32 %v916_v22, %v292_v30 }
  0xf5   :  { %v674_v34 = vpop.f32.mrf.mxu0  ;;  %v702_v35 = vpop.f32.mrf.mxu1 }
  0xf6   :  { %v336_v37 = vmax.f32 %v237_v31, 0.0  ;;  %v350_v38 = vmax.f32 %v293_v33, 0.0 }
  0xf7   :  { %v241_v39 = vpop.f32.mrf.mxu0  ;;  %v297_v40 = vpop.f32.mrf.mxu1 }
  0xf8   :  { %v566_v41 = vpack.c.bf16 %v336_v37, %v335_v36  ;;  %v601_v42 = vpack.c.bf16 %v350_v38, %v349_v32  ;;  %v298_v43 = vadd.f32 %v916_v22, %v297_v40  ;;  %v242_v46 = vadd.f32 %v916_v22, %v241_v39 }
  0xf9   :  { %v677_v44 = vpop.f32.mrf.mxu0  ;;  %v705_v45 = vpop.f32.mrf.mxu1 }
  0xfa   :  { %567 = vst [vmem:[%s985_s3] sm:$0xff] %v566_v41   ;;  %629 = vst [vmem:[%s985_s3 + $0x38] sm:$0xff] %v601_v42   ;;  %v351_v50 = vmax.f32 %v298_v43, 0.0  ;;  %v337_v54 = vmax.f32 %v242_v46, 0.0 }
  0xfb   :  { %v244_v47 = vpop.f32.mrf.mxu0  ;;  %v300_v48 = vpop.f32.mrf.mxu1 }
  0xfc   :  { %v245_v49 = vadd.f32 %v916_v22, %v244_v47  ;;  %v301_v51 = vadd.f32 %v916_v22, %v300_v48 }
  0xfd   :  { %v678_v52 = vpop.f32.mrf.mxu0  ;;  %v706_v53 = vpop.f32.mrf.mxu1 }
  0xfe   :  { %v338_v55 = vmax.f32 %v245_v49, 0.0  ;;  %v352_v56 = vmax.f32 %v301_v51, 0.0 }
  0xff   :  { %v249_v57 = vpop.f32.mrf.mxu0  ;;  %v305_v58 = vpop.f32.mrf.mxu1 }
 0x100   :  { %v571_v59 = vpack.c.bf16 %v338_v55, %v337_v54  ;;  %v606_v60 = vpack.c.bf16 %v352_v56, %v351_v50  ;;  %v306_v61 = vadd.f32 %v916_v22, %v305_v58  ;;  %v250_v0 = vadd.f32 %v916_v22, %v249_v57 }
 0x101   :  { %v681_v62 = vpop.f32.mrf.mxu0  ;;  %v709_v63 = vpop.f32.mrf.mxu1 }
 0x102   :  { %623 = vst [vmem:[%s985_s3 + $0x8] sm:$0xff] %v571_v59   ;;  %630 = vst [vmem:[%s985_s3 + $0x40] sm:$0xff] %v606_v60   ;;  %v353_v4 = vmax.f32 %v306_v61, 0.0  ;;  %v339_v8 = vmax.f32 %v250_v0, 0.0 }
 0x103   :  { %v252_v1 = vpop.f32.mrf.mxu0  ;;  %v308_v2 = vpop.f32.mrf.mxu1 }
 0x104   :  { %v253_v3 = vadd.f32 %v916_v22, %v252_v1  ;;  %v309_v5 = vadd.f32 %v916_v22, %v308_v2 }
 0x105   :  { %v682_v6 = vpop.f32.mrf.mxu0  ;;  %v710_v7 = vpop.f32.mrf.mxu1 }
 0x106   :  { %v340_v9 = vmax.f32 %v253_v3, 0.0  ;;  %v354_v10 = vmax.f32 %v309_v5, 0.0 }
 0x107   :  { %v257_v11 = vpop.f32.mrf.mxu0  ;;  %v313_v12 = vpop.f32.mrf.mxu1 }
 0x108   :  { %v576_v13 = vpack.c.bf16 %v340_v9, %v339_v8  ;;  %v611_v14 = vpack.c.bf16 %v354_v10, %v353_v4  ;;  %v314_v15 = vadd.f32 %v916_v22, %v313_v12  ;;  %v258_v18 = vadd.f32 %v916_v22, %v257_v11 }
 0x109   :  { %v685_v16 = vpop.f32.mrf.mxu0  ;;  %v713_v17 = vpop.f32.mrf.mxu1 }
 0x10a   :  { %624 = vst [vmem:[%s985_s3 + $0x10] sm:$0xff] %v576_v13   ;;  %631 = vst [vmem:[%s985_s3 + $0x48] sm:$0xff] %v611_v14   ;;  %v355_v23 = vmax.f32 %v314_v15, 0.0  ;;  %v341_v27 = vmax.f32 %v258_v18, 0.0 }
 0x10b   :  { %v260_v19 = vpop.f32.mrf.mxu0  ;;  %v316_v20 = vpop.f32.mrf.mxu1 }
 0x10c   :  { %v261_v21 = vadd.f32 %v916_v22, %v260_v19  ;;  %v317_v24 = vadd.f32 %v916_v22, %v316_v20 }
 0x10d   :  { %v686_v25 = vpop.f32.mrf.mxu0  ;;  %v714_v26 = vpop.f32.mrf.mxu1 }
 0x10e   :  { %v342_v28 = vmax.f32 %v261_v21, 0.0  ;;  %v356_v29 = vmax.f32 %v317_v24, 0.0 }
 0x10f   :  { %v265_v30 = vpop.f32.mrf.mxu0  ;;  %v321_v31 = vpop.f32.mrf.mxu1 }
 0x110   :  { %v581_v32 = vpack.c.bf16 %v342_v28, %v341_v27  ;;  %v616_v33 = vpack.c.bf16 %v356_v29, %v355_v23  ;;  %v322_v34 = vadd.f32 %v916_v22, %v321_v31  ;;  %v266_v37 = vadd.f32 %v916_v22, %v265_v30 }
 0x111   :  { %v689_v35 = vpop.f32.mrf.mxu0  ;;  %v717_v36 = vpop.f32.mrf.mxu1 }
 0x112   :  { %625 = vst [vmem:[%s985_s3 + $0x18] sm:$0xff] %v581_v32   ;;  %632 = vst [vmem:[%s985_s3 + $0x50] sm:$0xff] %v616_v33   ;;  %v357_v41 = vmax.f32 %v322_v34, 0.0  ;;  %v343_v45 = vmax.f32 %v266_v37, 0.0 }
 0x113   :  { %v268_v38 = vpop.f32.mrf.mxu0  ;;  %v324_v39 = vpop.f32.mrf.mxu1 }
 0x114   :  { %v269_v40 = vadd.f32 %v916_v22, %v268_v38  ;;  %v325_v42 = vadd.f32 %v916_v22, %v324_v39 }
 0x115   :  { %v690_v43 = vpop.f32.mrf.mxu0  ;;  %v718_v44 = vpop.f32.mrf.mxu1 }
 0x116   :  { %v344_v46 = vmax.f32 %v269_v40, 0.0  ;;  %v358_v47 = vmax.f32 %v325_v42, 0.0 }
 0x117   :  { %v273_v48 = vpop.f32.mrf.mxu0  ;;  %v329_v49 = vpop.f32.mrf.mxu1 }
 0x118   :  { %v586_v50 = vpack.c.bf16 %v344_v46, %v343_v45  ;;  %v621_v51 = vpack.c.bf16 %v358_v47, %v357_v41  ;;  %v330_v52 = vadd.f32 %v916_v22, %v329_v49  ;;  %v274_v55 = vadd.f32 %v916_v22, %v273_v48 }
 0x119   :  { %v693_v53 = vpop.f32.mrf.mxu0  ;;  %v721_v54 = vpop.f32.mrf.mxu1 }
 0x11a   :  { %626 = vst [vmem:[%s985_s3 + $0x20] sm:$0xff] %v586_v50   ;;  %633 = vst [vmem:[%s985_s3 + $0x58] sm:$0xff] %v621_v51   ;;  %v359_v56 = vmax.f32 %v330_v52, 0.0  ;;  %v345_v63 = vmax.f32 %v274_v55, 0.0 }
 0x11b   :  { %v276_v57 = vpop.f32.mrf.mxu0  ;;  %v332_v58 = vpop.f32.mrf.mxu1 }
 0x11c   :  { %v277_v59 = vadd.f32 %v916_v22, %v276_v57  ;;  %v562_v60 = vpack.c.bf16 %v359_v56, %v359_v56 }
 0x11d   :  { %v694_v61 = vpop.f32.mrf.mxu0  ;;  %v722_v62 = vpop.f32.mrf.mxu1 }
 0x11e   :  { %v346_v0 = vmax.f32 %v277_v59, 0.0  ;;  %485 = vst [vmem:[%s985_s3 + $0x60] sm:$0xf] %v562_v60 }
 0x11f   :  { %v281_v1 = vpop.f32.mrf.mxu0 }
 0x120   :  { %v591_v2 = vpack.c.bf16 %v346_v0, %v345_v63  ;;  %v282_v4 = vadd.f32 %v916_v22, %v281_v1 }
 0x121   :  { %v697_v3 = vpop.f32.mrf.mxu0 }
 0x122   :  { %627 = vst [vmem:[%s985_s3 + $0x28] sm:$0xff] %v591_v2   ;;  %v347_v8 = vmax.f32 %v282_v4, 0.0 }
 0x123   :  { %v284_v5 = vpop.f32.mrf.mxu0 }
 0x124   :  { %v285_v6 = vadd.f32 %v916_v22, %v284_v5 }
 0x125   :  { %v698_v7 = vpop.f32.mrf.mxu0 }
 0x126   :  { %v348_v9 = vmax.f32 %v285_v6, 0.0 }
 0x128   :  { %v596_v10 = vpack.c.bf16 %v348_v9, %v347_v8 }
 0x12a   :  { %628 = vst [vmem:[%s985_s3 + $0x30] sm:$0xff] %v596_v10  }
 0x12b   :  { %490 = vsyncpa [#allocation3], 1 }

// kernel: netv1_forward.5
= control target key start
LH: loop header
LB: loop body
LE: loop exit
PB: predicated region body
PF: predicated region fallthrough
CT: control target
= control target key end

     0   :  { %v1319_v24 = vmov 0.0   ;;  %vm1320_vm0 = vmmov 0   ;;  %s1654_s1 = inlined_call_operand.vmem [shape: bf16[640,128], index: 1, kind: input, shape index: {}]   ;;  %s1655_s0 = inlined_call_operand.vmem [shape: bf16[104,640], index: 0, kind: input, shape index: {}]   ;;  %s1656_s2 = inlined_call_operand.vmem [shape: f32[1,128], index: 2, kind: input, shape index: {}]   ;;  %s1657_s3 = inlined_call_operand.vmem [shape: bf16[104,128], index: 3, kind: output, shape index: {}]  }
   0x1   :  { %v1232_v0 = vld [vmem:[%s1654_s1 + $0x78] sm:$0xff]   ;;  %v1234_v2 = vld [vmem:[%s1654_s1 + $0x70] sm:$0xff]   ;;  %v1236_v4 = vld [vmem:[%s1654_s1 + $0x68] sm:$0xff]  }
   0x2   :  { %v1233_v1 = vld [vmem:[%s1654_s1 + $0x38] sm:$0xff]   ;;  %1039 = vmatprep.subr.bf16.mxu0 %v1232_v0  ;;  %1214 = vmatprep.subr.bf16.mxu1 %v1232_v0  ;;  %v1235_v3 = vld [vmem:[%s1654_s1 + $0x30] sm:$0xff]   ;;  %v1237_v5 = vld [vmem:[%s1654_s1 + $0x28] sm:$0xff]  }
   0x3   :  { %1040 = vmatpush3.bf16.msra.mxu0 %v1233_v1  ;;  %1222 = vmatpush3.bf16.msra.mxu1 %v1233_v1  ;;  %v1238_v6 = vld [vmem:[%s1654_s1 + $0x60] sm:$0xff]   ;;  %v1240_v8 = vld [vmem:[%s1654_s1 + $0x58] sm:$0xff]   ;;  %v1242_v10 = vld [vmem:[%s1654_s1 + $0x50] sm:$0xff]  }
   0x4   :  { %1041 = vmatprep.subr.bf16.mxu0 %v1234_v2  ;;  %1215 = vmatprep.subr.bf16.mxu1 %v1234_v2  ;;  %v1239_v7 = vld [vmem:[%s1654_s1 + $0x20] sm:$0xff]   ;;  %v1241_v9 = vld [vmem:[%s1654_s1 + $0x18] sm:$0xff]   ;;  %v1243_v13 = vld [vmem:[%s1654_s1 + $0x10] sm:$0xff]  }
   0x5   :  { %v1250_v11 = vld [vmem:[%s1655_s0 + $0x4] ss:$20 sps:$4 sm:$0xff]   ;;  %v1244_v14 = vld [vmem:[%s1654_s1 + $0x48] sm:$0xff]   ;;  %v1248_v18 = vld [vmem:[%s1655_s0] ss:$20 sps:$4 sm:$0xff]  }
   0x6   :  { %v1253_v12 = vld [vmem:[%s1655_s0 + $0xa4] ss:$20 sps:$4 sm:$0xff]   ;;  %587 = vmatprep.mubr.bf16.mxu0 %v1250_v11  ;;  %v1245_v15 = vld [vmem:[%s1654_s1 + $0x8] sm:$0xff]   ;;  %v1251_v19 = vld [vmem:[%s1655_s0 + $0xa0] ss:$20 sps:$4 sm:$0xff]  }
   0x7   :  { %1042 = vmatpush3.bf16.msra.mxu0 %v1235_v3  ;;  %1223 = vmatpush3.bf16.msra.mxu1 %v1235_v3  ;;  %v1246_v16 = vld [vmem:[%s1654_s1 + $0x40] sm:$0xff]   ;;  %v1254_v20 = vld [vmem:[%s1654_s1 + $0xf8] sm:$0xff]   ;;  %v1257_v23 = vld [vmem:[%s1654_s1 + $0xf0] sm:$0xff]  }
   0x8   :  { %1043 = vmatprep.subr.bf16.mxu0 %v1236_v4  ;;  %1216 = vmatprep.subr.bf16.mxu1 %v1236_v4  ;;  %v1247_v17 = vld [vmem:[%s1654_s1] sm:$0xff]   ;;  %v1255_v21 = vld [vmem:[%s1654_s1 + $0xb8] sm:$0xff]   ;;  %v1258_v27 = vld [vmem:[%s1654_s1 + $0xb0] sm:$0xff]  }
   0x9   :  { %619 = vmatprep.mubr.bf16.mxu1 %v1253_v12  ;;  %v1256_v22 = vld [vmem:[%s1654_s1 + $0x138] sm:$0xff]   ;;  %v1260_v25 = vld [vmem:[%s1655_s0 + $0x2c] ss:$20 sps:$4 sm:$0xff]   ;;  %v1259_v28 = vld [vmem:[%s1654_s1 + $0x130] sm:$0xff]  }
   0xa   :  { %v1264_v26 = vld [vmem:[%s1655_s0 + $0xcc] ss:$20 sps:$4 sm:$0xff]   ;;  %v1262_v29 = vld [vmem:[%s1655_s0 + $0x28] ss:$20 sps:$4 sm:$0xff]   ;;  %v51_v33 = vld [vmem:[%s1655_s0 + $0xf0] sm:$0xff] }
   0xb   :  { %1044 = vmatpush3.bf16.msra.mxu0 %v1237_v5  ;;  %1224 = vmatpush3.bf16.msra.mxu1 %v1237_v5  ;;  %v1263_v30 = vld [vmem:[%s1654_s1 + $0xe8] sm:$0xff]   ;;  %v1269_v35 = vld [vmem:[%s1654_s1 + $0xe0] sm:$0xff]   ;;  %v934_v37 = vcombine.high %v51_v33, %v51_v33  ;;  %v1275_v40 = vld [vmem:[%s1654_s1 + $0xd8] sm:$0xff]   ;;  %v933_v43 = vcombine.low %v51_v33, %v51_v33 }
   0xc   :  { %1045 = vmatprep.subr.bf16.mxu0 %v1238_v6  ;;  %1217 = vmatprep.subr.bf16.mxu1 %v1238_v6  ;;  %v1266_v31 = vld [vmem:[%s1654_s1 + $0xa8] sm:$0xff]   ;;  %v1270_v38 = vld [vmem:[%s1654_s1 + $0xa0] sm:$0xff]   ;;  %v1277_v42 = vld [vmem:[%s1654_s1 + $0x98] sm:$0xff]  }
   0xd   :  { %v1268_v32 = vld [vmem:[%s1655_s0 + $0xc8] ss:$20 sps:$4 sm:$0xff]   ;;  %v1271_v39 = vld [vmem:[%s1654_s1 + $0x120] sm:$0xff]   ;;  %v1280_v45 = vld [vmem:[%s1654_s1 + $0xd0] sm:$0xff]  }
   0xe   :  { %v1267_v34 = vld [vmem:[%s1654_s1 + $0x128] sm:$0xff]   ;;  %v1274_v41 = vld [vmem:[%s1655_s0 + $0x50] ss:$20 sps:$4 sm:$0xff]   ;;  %v1278_v44 = vld [vmem:[%s1654_s1 + $0x118] sm:$0xff]  }
   0xf   :  { %1046 = vmatpush3.bf16.msra.mxu0 %v1239_v7  ;;  %1225 = vmatpush3.bf16.msra.mxu1 %v1239_v7  ;;  %v1272_v36 = vld [vmem:[%s1655_s0 + $0x54] ss:$20 sps:$4 sm:$0xff]   ;;  %v1283_v46 = vld [vmem:[%s1655_s0 + $0x7c] ss:$20 sps:$4 sm:$0xff]   ;;  %v1294_v47 = vld [vmem:[%s1655_s0 + $0xc] ss:$20 sps:$4 sm:$0xff]  }
  0x10   :  { %1047 = vmatprep.subr.bf16.mxu0 %v1240_v8  ;;  %1218 = vmatprep.subr.bf16.mxu1 %v1240_v8  ;;  %v1281_v48 = vld [vmem:[%s1654_s1 + $0x90] sm:$0xff]   ;;  %v1286_v50 = vld [vmem:[%s1654_s1 + $0xc8] sm:$0xff]   ;;  %v1289_v54 = vld [vmem:[%s1654_s1 + $0xc0] sm:$0xff]  }
  0x11   :  { %v1282_v49 = vld [vmem:[%s1654_s1 + $0x110] sm:$0xff]   ;;  %v1285_v51 = vld [vmem:[%s1655_s0 + $0x78] ss:$20 sps:$4 sm:$0xff]   ;;  %v1290_v55 = vld [vmem:[%s1654_s1 + $0x80] sm:$0xff]  }
  0x12   :  { %v1287_v52 = vld [vmem:[%s1654_s1 + $0x88] sm:$0xff]   ;;  %v1291_v56 = vld [vmem:[%s1654_s1 + $0x100] sm:$0xff]   ;;  %v1300_v62 = vld [vmem:[%s1655_s0 + $0x5c] ss:$20 sps:$4 sm:$0xff]  }
  0x13   :  { %1048 = vmatpush3.bf16.msra.mxu0 %v1241_v9  ;;  %1226 = vmatpush3.bf16.msra.mxu1 %v1241_v9  ;;  %v1288_v53 = vld [vmem:[%s1654_s1 + $0x108] sm:$0xff]   ;;  %v1295_v58 = vld [vmem:[%s1655_s0 + $0x10] ss:$20 sps:$4 sm:$0xff]   ;;  %v1303_v0 = vld [vmem:[%s1655_s0 + $0x60] ss:$20 sps:$4 sm:$0xff]  }
  0x14   :  { %1049 = vmatprep.subr.bf16.mxu0 %v1242_v10  ;;  %1219 = vmatprep.subr.bf16.mxu1 %v1242_v10  ;;  %v1292_v57 = vld [vmem:[%s1655_s0 + $0x8] ss:$20 sps:$4 sm:$0xff]   ;;  %v1298_v60 = vld [vmem:[%s1655_s0 + $0x30] ss:$20 sps:$4 sm:$0xff]   ;;  %v1299_v61 = vld [vmem:[%s1655_s0 + $0x38] ss:$20 sps:$4 sm:$0xff]  }
  0x15   :  { %v1296_v59 = vld [vmem:[%s1655_s0 + $0x34] ss:$20 sps:$4 sm:$0xff]   ;;  %v1302_v63 = vld [vmem:[%s1655_s0 + $0x58] ss:$20 sps:$4 sm:$0xff]   ;;  %v1311_v6 = vld [vmem:[%s1655_s0 + $0xb0] ss:$20 sps:$4 sm:$0xff]  }
  0x16   :  { %v1304_v1 = vld [vmem:[%s1655_s0 + $0x84] ss:$20 sps:$4 sm:$0xff]   ;;  %v1306_v2 = vld [vmem:[%s1655_s0 + $0x80] ss:$20 sps:$4 sm:$0xff]   ;;  %v1307_v3 = vld [vmem:[%s1655_s0 + $0x88] ss:$20 sps:$4 sm:$0xff]  }
  0x17   :  { %1050 = vmatpush3.bf16.msra.mxu0 %v1243_v13  ;;  %1227 = vmatpush3.bf16.msra.mxu1 %v1243_v13  ;;  %v1308_v4 = vld [vmem:[%s1655_s0 + $0xac] ss:$20 sps:$4 sm:$0xff]   ;;  %v1310_v5 = vld [vmem:[%s1655_s0 + $0xa8] ss:$20 sps:$4 sm:$0xff]   ;;  %v1314_v9 = vld [vmem:[%s1655_s0 + $0xd0] ss:$20 sps:$4 sm:$0xff]  }
  0x18   :  { %1051 = vmatprep.subr.bf16.mxu0 %v1244_v14  ;;  %1220 = vmatprep.subr.bf16.mxu1 %v1244_v14  ;;  %v1312_v7 = vld [vmem:[%s1655_s0 + $0xd4] ss:$20 sps:$4 sm:$0xff]   ;;  %v52_v8 = vld [vmem:[%s1655_s0 + $0xf8] sm:$0xff]  ;;  %v1318_v13 = vld [vmem:[%s1655_s0 + $0x100] ss:$0 sps:$4 sm:$0xff]  }
  0x19   :  { %v1315_v10 = vld [vmem:[%s1655_s0 + $0xd8] ss:$20 sps:$4 sm:$0xff]   ;;  %v936_v11 = vcombine.high %v52_v8, %v52_v8  ;;  %v935_v12 = vcombine.low %v52_v8, %v52_v8 }
  0x1b   :  { %1052 = vmatpush3.bf16.msra.mxu0 %v1245_v15  ;;  %1228 = vmatpush3.bf16.msra.mxu1 %v1245_v15 }
  0x1c   :  { %1053 = vmatprep.subr.bf16.mxu0 %v1246_v16  ;;  %1221 = vmatprep.subr.bf16.mxu1 %v1246_v16 }
  0x1f   :  { %1054 = vmatpush3.bf16.msra.mxu0 %v1247_v17  ;;  %1229 = vmatpush3.bf16.msra.mxu1 %v1247_v17 }
  0x20   :  { %1097 = vmatprep.subr.bf16.mxu1 %v1254_v20  ;;  %1170 = vmatprep.subr.bf16.mxu0 %v1319_v24 }
  0x22   :  { %588 = vmatmul.mubr.bf16.vlgmr.msra.gmra.mxu0 %v1248_v18  ;;  %620 = vmatmul.mubr.bf16.vlgmr.msra.gmra.mxu1 %v1251_v19 }
  0x23   :  { %1098 = vmatpush3.bf16.msra.mxu1 %v1255_v21  ;;  %1171 = vmatpush3.bf16.msra.mxu0 %v1256_v22 }
  0x24   :  { %1099 = vmatprep.subr.bf16.mxu1 %v1257_v23  ;;  %1172 = vmatprep.subr.bf16.mxu0 %v1319_v24 }
  0x25   :  { %595 = vmatprep.mubr.bf16.mxu0 %v1260_v25  ;;  %627 = vmatprep.mubr.bf16.mxu1 %v1264_v26 }
  0x27   :  { %1100 = vmatpush3.bf16.msra.mxu1 %v1258_v27  ;;  %1173 = vmatpush3.bf16.msra.mxu0 %v1259_v28 }
  0x28   :  { %1101 = vmatprep.subr.bf16.mxu1 %v1263_v30  ;;  %1174 = vmatprep.subr.bf16.mxu0 %v1319_v24 }
  0x2a   :  { %596 = vmatmul.mubr.bf16.gmra.mxu0 %v1262_v29  ;;  %628 = vmatmul.mubr.bf16.gmra.mxu1 %v1268_v32 }
  0x2b   :  { %1102 = vmatpush3.bf16.msra.mxu1 %v1266_v31  ;;  %1175 = vmatpush3.bf16.msra.mxu0 %v1267_v34 }
  0x2c   :  { %1103 = vmatprep.subr.bf16.mxu1 %v1269_v35  ;;  %1176 = vmatprep.subr.bf16.mxu0 %v1319_v24 }
  0x2d   :  { %603 = vmatprep.mubr.bf16.mxu0 %v1272_v36  ;;  %635 = vmatprep.mubr.bf16.mxu1 %v934_v37 }
  0x2f   :  { %1104 = vmatpush3.bf16.msra.mxu1 %v1270_v38  ;;  %1177 = vmatpush3.bf16.msra.mxu0 %v1271_v39 }
  0x30   :  { %1105 = vmatprep.subr.bf16.mxu1 %v1275_v40  ;;  %1178 = vmatprep.subr.bf16.mxu0 %v1319_v24 }
  0x32   :  { %604 = vmatmul.mubr.bf16.gmra.mxu0 %v1274_v41  ;;  %636 = vmatmul.mubr.bf16.gmra.mxu1 %v933_v43 }
  0x33   :  { %1106 = vmatpush3.bf16.msra.mxu1 %v1277_v42  ;;  %1179 = vmatpush3.bf16.msra.mxu0 %v1278_v44 }
  0x34   :  { %1107 = vmatprep.subr.bf16.mxu1 %v1280_v45  ;;  %1180 = vmatprep.subr.bf16.mxu0 %v1319_v24 }
  0x35   :  { %611 = vmatprep.mubr.bf16.mxu0 %v1283_v46  ;;  %675 = vmatprep.mubr.bf16.mxu1 %v1294_v47  ;;  %v1607_v47 = vld [vmem:[%s1656_s2] ss:$0 sm:$0xff] }
  0x37   :  { %1108 = vmatpush3.bf16.msra.mxu1 %v1281_v48  ;;  %1181 = vmatpush3.bf16.msra.mxu0 %v1282_v49 }
  0x38   :  { %1109 = vmatprep.subr.bf16.mxu1 %v1286_v50  ;;  %1182 = vmatprep.subr.bf16.mxu0 %v1319_v24 }
  0x3a   :  { %612 = vmatmul.mubr.bf16.gmra.mxu0 %v1285_v51 }
  0x3b   :  { %1110 = vmatpush3.bf16.msra.mxu1 %v1287_v52  ;;  %1183 = vmatpush3.bf16.msra.mxu0 %v1288_v53 }
  0x3c   :  { %1111 = vmatprep.subr.bf16.mxu1 %v1289_v54  ;;  %1184 = vmatprep.subr.bf16.mxu0 %v1319_v24 }
  0x3d   :  { %1186 = vmatprep.mubr.msk.bf16.mxu0 %vm1320_vm0, %v1319_v24 }
  0x3f   :  { %1112 = vmatpush3.bf16.msra.mxu1 %v1290_v55  ;;  %1185 = vmatpush3.bf16.msra.mxu0 %v1291_v56 }
  0x42   :  { %676 = vmatmul.mubr.bf16.vlgmr.msra.gmra.mxu1 %v1292_v57  ;;  %1187 = vmatmul.mubr.bf16.vlgmr.msra.gmra.mxu0 %v1295_v58 }
  0x43   :  { %683 = vmatprep.mubr.bf16.mxu1 %v1296_v59  ;;  %1190 = vmatprep.mubr.msk.bf16.mxu0 %vm1320_vm0, %v1319_v24 }
  0x4a   :  { %684 = vmatmul.mubr.bf16.gmra.mxu1 %v1298_v60  ;;  %1191 = vmatmul.mubr.bf16.gmra.mxu0 %v1299_v61 }
  0x4b   :  { %691 = vmatprep.mubr.bf16.mxu1 %v1300_v62  ;;  %1194 = vmatprep.mubr.msk.bf16.mxu0 %vm1320_vm0, %v1319_v24 }
  0x52   :  { %692 = vmatmul.mubr.bf16.gmra.mxu1 %v1302_v63  ;;  %1195 = vmatmul.mubr.bf16.gmra.mxu0 %v1303_v0 }
  0x53   :  { %699 = vmatprep.mubr.bf16.mxu1 %v1304_v1  ;;  %1198 = vmatprep.mubr.msk.bf16.mxu0 %vm1320_vm0, %v1319_v24 }
  0x5a   :  { %700 = vmatmul.mubr.bf16.gmra.mxu1 %v1306_v2  ;;  %1199 = vmatmul.mubr.bf16.gmra.mxu0 %v1307_v3 }
  0x5b   :  { %707 = vmatprep.mubr.bf16.mxu1 %v1308_v4  ;;  %1202 = vmatprep.mubr.msk.bf16.mxu0 %vm1320_vm0, %v1319_v24 }
  0x62   :  { %708 = vmatmul.mubr.bf16.gmra.mxu1 %v1310_v5  ;;  %1203 = vmatmul.mubr.bf16.gmra.mxu0 %v1311_v6 }
  0x63   :  { %715 = vmatprep.mubr.bf16.mxu1 %v1312_v7  ;;  %1206 = vmatprep.mubr.msk.bf16.mxu0 %vm1320_vm0, %v1319_v24 }
  0x6a   :  { %716 = vmatmul.mubr.bf16.gmra.mxu1 %v1314_v9  ;;  %1207 = vmatmul.mubr.bf16.gmra.mxu0 %v1315_v10 }
  0x6b   :  { %723 = vmatprep.mubr.bf16.mxu1 %v936_v11  ;;  %1210 = vmatprep.mubr.msk.bf16.mxu0 %vm1320_vm0, %v1319_v24 }
  0x72   :  { %724 = vmatmul.mubr.bf16.gmra.mxu1 %v935_v12  ;;  %1211 = vmatmul.mubr.bf16.gmra.mxu0 %v1318_v13 }
  0xe2   :  { %v1055_v14 = vpop.f32.mrf.mxu0  ;;  %v1079_v15 = vpop.f32.mrf.mxu1 }
  0xe4   :  { %v1056_v16 = vpop.f32.mrf.mxu0  ;;  %v1080_v17 = vpop.f32.mrf.mxu1 }
  0xe5   :  { %v1582_v18 = vadd.f32 %v1080_v17, %v1079_v15  ;;  %v1057_v44 = vadd.f32 %v1056_v16, %v1055_v14 }
  0xe6   :  { %v1058_v19 = vpop.f32.mrf.mxu0  ;;  %v1584_v20 = vpop.f32.mrf.mxu1 }
  0xe7   :  { %v590_v50 = vadd.f32 %v1057_v44, %v1607_v47 }
  0xe8   :  { %v1059_v21 = vpop.f32.mrf.mxu0  ;;  %v1586_v22 = vpop.f32.mrf.mxu1 }
  0xe9   :  { %v1060_v51 = vadd.f32 %v1059_v21, %v1058_v19 }
  0xea   :  { %v1061_v23 = vpop.f32.mrf.mxu0  ;;  %v1085_v24 = vpop.f32.mrf.mxu1 }
  0xeb   :  { %v593_v58 = vadd.f32 %v1060_v51, %v1607_v47 }
  0xec   :  { %v1062_v25 = vpop.f32.mrf.mxu0  ;;  %v1086_v26 = vpop.f32.mrf.mxu1 }
  0xed   :  { %v1588_v27 = vadd.f32 %v1086_v26, %v1085_v24  ;;  %v1063_v59 = vadd.f32 %v1062_v25, %v1061_v23 }
  0xee   :  { %v1064_v28 = vpop.f32.mrf.mxu0  ;;  %v1590_v29 = vpop.f32.mrf.mxu1 }
  0xef   :  { %v598_v3 = vadd.f32 %v1063_v59, %v1607_v47 }
  0xf0   :  { %v1065_v30 = vpop.f32.mrf.mxu0  ;;  %v1592_v31 = vpop.f32.mrf.mxu1 }
  0xf1   :  { %v1066_v4 = vadd.f32 %v1065_v30, %v1064_v28 }
  0xf2   :  { %v1067_v32 = vpop.f32.mrf.mxu0  ;;  %v1594_v33 = vpop.f32.mrf.mxu1 }
  0xf3   :  { %v601_v14 = vadd.f32 %v1066_v4, %v1607_v47 }
  0xf4   :  { %v1068_v34 = vpop.f32.mrf.mxu0  ;;  %v1596_v35 = vpop.f32.mrf.mxu1 }
  0xf5   :  { %v1069_v15 = vadd.f32 %v1068_v34, %v1067_v32 }
  0xf6   :  { %v1070_v36 = vpop.f32.mrf.mxu0  ;;  %v1094_v37 = vpop.f32.mrf.mxu1 }
  0xf7   :  { %v606_v28 = vadd.f32 %v1069_v15, %v1607_v47 }
  0xf8   :  { %v1071_v38 = vpop.f32.mrf.mxu0  ;;  %v1095_v39 = vpop.f32.mrf.mxu1 }
  0xf9   :  { %v1072_v30 = vadd.f32 %v1071_v38, %v1070_v36 }
  0xfa   :  { %v1598_v40 = vpop.f32.mrf.mxu0 }
  0xfc   :  { %v1074_v41 = vpop.f32.mrf.mxu0 }
  0xfd   :  { %v1075_v51 = vadd.f32 %v1074_v41, %v1598_v40 }
  0xfe   :  { %v1600_v42 = vpop.f32.mrf.mxu0 }
 0x100   :  { %v1602_v43 = vpop.f32.mrf.mxu0 }
 0x101   :  { %v1078_v59 = vadd.f32 %v1602_v43, %v1600_v42 }
 0x102   :  { %v1113_v45 = vpop.f32.mrf.mxu1  ;;  %v765_v46 = vpop.f32.mrf.mxu0 }
 0x104   :  { %v1114_v48 = vpop.f32.mrf.mxu1  ;;  %v1188_v49 = vpop.f32.mrf.mxu0 }
 0x105   :  { %v1115_v52 = vadd.f32 %v1114_v48, %v1113_v45 }
 0x106   :  { %v1116_v53 = vpop.f32.mrf.mxu1  ;;  %v768_v54 = vpop.f32.mrf.mxu0 }
 0x107   :  { %v678_v55 = vadd.f32 %v1115_v52, %v590_v50  ;;  %v609_v50 = vadd.f32 %v1072_v30, %v1607_v47 }
 0x108   :  { %v1117_v56 = vpop.f32.mrf.mxu1  ;;  %v1189_v57 = vpop.f32.mrf.mxu0 }
 0x109   :  { %v1118_v60 = vadd.f32 %v1117_v56, %v1116_v53  ;;  %v766_v63 = vadd.f32 %v765_v46, %v678_v55 }
 0x10a   :  { %v1119_v61 = vpop.f32.mrf.mxu1  ;;  %v773_v62 = vpop.f32.mrf.mxu0 }
 0x10b   :  { %v681_v0 = vadd.f32 %v1118_v60, %v593_v58  ;;  %v819_v9 = vmax.f32 %v766_v63, 0.0  ;;  %v614_v58 = vadd.f32 %v1075_v51, %v1607_v47 }
 0x10c   :  { %v1120_v1 = vpop.f32.mrf.mxu1  ;;  %v1192_v2 = vpop.f32.mrf.mxu0 }
 0x10d   :  { %v769_v5 = vadd.f32 %v768_v54, %v681_v0  ;;  %v1121_v6 = vadd.f32 %v1120_v1, %v1119_v61 }
 0x10e   :  { %v1122_v7 = vpop.f32.mrf.mxu1  ;;  %v776_v8 = vpop.f32.mrf.mxu0 }
 0x10f   :  { %v820_v10 = vmax.f32 %v769_v5, 0.0  ;;  %v686_v11 = vadd.f32 %v1121_v6, %v598_v3  ;;  %v617_v3 = vadd.f32 %v1078_v59, %v1607_v47 }
 0x110   :  { %v1123_v12 = vpop.f32.mrf.mxu1  ;;  %v1193_v13 = vpop.f32.mrf.mxu0 }
 0x111   :  { %v1007_v16 = vpack.c.bf16 %v820_v10, %v819_v9  ;;  %v1124_v17 = vadd.f32 %v1123_v12, %v1122_v7  ;;  %v774_v23 = vadd.f32 %v773_v62, %v686_v11  ;;  %v622_v10 = vadd.f32 %v1582_v18, %v1607_v47 }
 0x112   :  { %v1125_v19 = vpop.f32.mrf.mxu1  ;;  %v781_v21 = vpop.f32.mrf.mxu0  ;;  %v1084_v11 = vadd.f32 %v1586_v22, %v1584_v20 }
 0x113   :  { %1008 = vst [vmem:[%s1657_s3] sm:$0xff] %v1007_v16   ;;  %v689_v24 = vadd.f32 %v1124_v17, %v601_v14  ;;  %v821_v32 = vmax.f32 %v774_v23, 0.0 }
 0x114   :  { %v1126_v25 = vpop.f32.mrf.mxu1  ;;  %v1196_v26 = vpop.f32.mrf.mxu0 }
 0x115   :  { %v777_v37 = vadd.f32 %v776_v8, %v689_v24  ;;  %v1127_v39 = vadd.f32 %v1126_v25, %v1125_v19  ;;  %v625_v24 = vadd.f32 %v1084_v11, %v1607_v47 }
 0x116   :  { %v1128_v44 = vpop.f32.mrf.mxu1  ;;  %v784_v45 = vpop.f32.mrf.mxu0 }
 0x117   :  { %v822_v34 = vmax.f32 %v777_v37, 0.0  ;;  %v694_v46 = vadd.f32 %v1127_v39, %v606_v28  ;;  %v630_v39 = vadd.f32 %v1588_v27, %v1607_v47 }
 0x118   :  { %v1129_v48 = vpop.f32.mrf.mxu1  ;;  %v1197_v49 = vpop.f32.mrf.mxu0 }
 0x119   :  { %v1012_v52 = vpack.c.bf16 %v822_v34, %v821_v32  ;;  %v1130_v53 = vadd.f32 %v1129_v48, %v1128_v44  ;;  %v782_v36 = vadd.f32 %v781_v21, %v694_v46  ;;  %v1090_v44 = vadd.f32 %v1592_v31, %v1590_v29 }
 0x11a   :  { %v1131_v54 = vpop.f32.mrf.mxu1  ;;  %v789_v55 = vpop.f32.mrf.mxu0 }
 0x11b   :  { %1034 = vst [vmem:[%s1657_s3 + $0x8] sm:$0xff] %v1012_v52   ;;  %v697_v38 = vadd.f32 %v1130_v53, %v609_v50  ;;  %v823_v62 = vmax.f32 %v782_v36, 0.0  ;;  %v633_v53 = vadd.f32 %v1090_v44, %v1607_v47 }
 0x11c   :  { %v1132_v56 = vpop.f32.mrf.mxu1  ;;  %v1200_v57 = vpop.f32.mrf.mxu0 }
 0x11d   :  { %v785_v60 = vadd.f32 %v784_v45, %v697_v38  ;;  %v1133_v61 = vadd.f32 %v1132_v56, %v1131_v54  ;;  %v1093_v54 = vadd.f32 %v1596_v35, %v1594_v33 }
 0x11e   :  { %v1134_v40 = vpop.f32.mrf.mxu1  ;;  %v792_v41 = vpop.f32.mrf.mxu0 }
 0x11f   :  { %v824_v63 = vmax.f32 %v785_v60, 0.0  ;;  %v702_v0 = vadd.f32 %v1133_v61, %v614_v58  ;;  %v638_v58 = vadd.f32 %v1093_v54, %v1607_v47 }
 0x120   :  { %v1135_v1 = vpop.f32.mrf.mxu1  ;;  %v1201_v2 = vpop.f32.mrf.mxu0 }
 0x121   :  { %v1017_v4 = vpack.c.bf16 %v824_v63, %v823_v62  ;;  %v1136_v5 = vadd.f32 %v1135_v1, %v1134_v40  ;;  %v790_v42 = vadd.f32 %v789_v55, %v702_v0 }
 0x122   :  { %v1137_v6 = vpop.f32.mrf.mxu1  ;;  %v797_v7 = vpop.f32.mrf.mxu0 }
 0x123   :  { %1035 = vst [vmem:[%s1657_s3 + $0x10] sm:$0xff] %v1017_v4   ;;  %v705_v43 = vadd.f32 %v1136_v5, %v617_v3  ;;  %v825_v16 = vmax.f32 %v790_v42, 0.0 }
 0x124   :  { %v1138_v8 = vpop.f32.mrf.mxu1  ;;  %v1204_v9 = vpop.f32.mrf.mxu0 }
 0x125   :  { %v793_v12 = vadd.f32 %v792_v41, %v705_v43  ;;  %v1139_v13 = vadd.f32 %v1138_v8, %v1137_v6 }
 0x126   :  { %v1140_v14 = vpop.f32.mrf.mxu1  ;;  %v800_v15 = vpop.f32.mrf.mxu0 }
 0x127   :  { %v826_v17 = vmax.f32 %v793_v12, 0.0  ;;  %v710_v19 = vadd.f32 %v1139_v13, %v622_v10 }
 0x128   :  { %v1141_v21 = vpop.f32.mrf.mxu1  ;;  %v1205_v23 = vpop.f32.mrf.mxu0 }
 0x129   :  { %v1022_v25 = vpack.c.bf16 %v826_v17, %v825_v16  ;;  %v1142_v26 = vadd.f32 %v1141_v21, %v1140_v14  ;;  %v798_v18 = vadd.f32 %v797_v7, %v710_v19 }
 0x12a   :  { %v1143_v28 = vpop.f32.mrf.mxu1  ;;  %v805_v30 = vpop.f32.mrf.mxu0 }
 0x12b   :  { %1036 = vst [vmem:[%s1657_s3 + $0x18] sm:$0xff] %v1022_v25   ;;  %v713_v20 = vadd.f32 %v1142_v26, %v625_v24  ;;  %v827_v48 = vmax.f32 %v798_v18, 0.0 }
 0x12c   :  { %v1144_v22 = vpop.f32.mrf.mxu1  ;;  %v1208_v37 = vpop.f32.mrf.mxu0 }
 0x12d   :  { %v801_v45 = vadd.f32 %v800_v15, %v713_v20  ;;  %v1145_v32 = vadd.f32 %v1144_v22, %v1143_v28 }
 0x12e   :  { %v1146_v34 = vpop.f32.mrf.mxu1  ;;  %v808_v46 = vpop.f32.mrf.mxu0 }
 0x12f   :  { %v828_v49 = vmax.f32 %v801_v45, 0.0  ;;  %v718_v50 = vadd.f32 %v1145_v32, %v630_v39 }
 0x130   :  { %v1147_v51 = vpop.f32.mrf.mxu1  ;;  %v1209_v52 = vpop.f32.mrf.mxu0 }
 0x131   :  { %v1027_v55 = vpack.c.bf16 %v828_v49, %v827_v48  ;;  %v1148_v36 = vadd.f32 %v1147_v51, %v1146_v34  ;;  %v806_v29 = vadd.f32 %v805_v30, %v718_v50 }
 0x132   :  { %v1149_v27 = vpop.f32.mrf.mxu1  ;;  %v813_v38 = vpop.f32.mrf.mxu0 }
 0x133   :  { %1037 = vst [vmem:[%s1657_s3 + $0x20] sm:$0xff] %v1027_v55   ;;  %v721_v31 = vadd.f32 %v1148_v36, %v633_v53  ;;  %v829_v41 = vmax.f32 %v806_v29, 0.0 }
 0x134   :  { %v1150_v56 = vpop.f32.mrf.mxu1  ;;  %v1212_v57 = vpop.f32.mrf.mxu0 }
 0x135   :  { %v809_v59 = vadd.f32 %v808_v46, %v721_v31  ;;  %v1151_v60 = vadd.f32 %v1150_v56, %v1149_v27 }
 0x136   :  { %v1152_v61 = vpop.f32.mrf.mxu1  ;;  %v816_v40 = vpop.f32.mrf.mxu0 }
 0x137   :  { %v830_v33 = vmax.f32 %v809_v59, 0.0  ;;  %v726_v35 = vadd.f32 %v1151_v60, %v638_v58 }
 0x138   :  { %v1153_v62 = vpop.f32.mrf.mxu1  ;;  %v1213_v63 = vpop.f32.mrf.mxu0 }
 0x139   :  { %v1032_v0 = vpack.c.bf16 %v830_v33, %v829_v41  ;;  %v814_v1 = vadd.f32 %v813_v38, %v726_v35 }
 0x13b   :  { %1038 = vst [vmem:[%s1657_s3 + $0x28] sm:$0xff] %v1032_v0   ;;  %v831_v2 = vmax.f32 %v814_v1, 0.0 }
 0x13d   :  { %v1003_v3 = vpack.c.bf16 %v831_v2, %v831_v2 }
 0x13f   :  { %897 = vst [vmem:[%s1657_s3 + $0x30] sm:$0xf] %v1003_v3 }

// kernel: netv1_forward.6
= control target key start
LH: loop header
LB: loop body
LE: loop exit
PB: predicated region body
PF: predicated region fallthrough
CT: control target
= control target key end

     0   :  { %s1197_s1 = inlined_call_operand.vmem [shape: bf16[640,128], index: 1, kind: input, shape index: {}]   ;;  %s1198_s0 = inlined_call_operand.vmem [shape: bf16[56,640], index: 0, kind: input, shape index: {}]   ;;  %s1199_s2 = inlined_call_operand.vmem [shape: f32[1,128], index: 2, kind: input, shape index: {}]   ;;  %s1200_s3 = inlined_call_operand.vmem [shape: bf16[56,128], index: 3, kind: output, shape index: {}]  }
   0x1   :  { %v922_v0 = vld [vmem:[%s1197_s1 + $0x78] sm:$0xff]   ;;  %v926_v4 = vld [vmem:[%s1197_s1 + $0x70] sm:$0xff]   ;;  %v930_v8 = vld [vmem:[%s1197_s1 + $0x68] sm:$0xff]  }
   0x2   :  { %v923_v1 = vld [vmem:[%s1197_s1 + $0xf8] sm:$0xff]   ;;  %790 = vmatprep.subr.bf16.mxu0 %v922_v0  ;;  %v927_v5 = vld [vmem:[%s1197_s1 + $0xf0] sm:$0xff]   ;;  %v931_v9 = vld [vmem:[%s1197_s1 + $0xe8] sm:$0xff]  }
   0x3   :  { %v924_v2 = vld [vmem:[%s1197_s1 + $0x38] sm:$0xff]   ;;  %830 = vmatprep.subr.bf16.mxu1 %v923_v1  ;;  %v928_v6 = vld [vmem:[%s1197_s1 + $0x30] sm:$0xff]   ;;  %v932_v10 = vld [vmem:[%s1197_s1 + $0x28] sm:$0xff]  }
   0x4   :  { %v925_v3 = vld [vmem:[%s1197_s1 + $0xb8] sm:$0xff]   ;;  %791 = vmatpush3.bf16.msra.mxu0 %v924_v2  ;;  %v929_v7 = vld [vmem:[%s1197_s1 + $0xb0] sm:$0xff]   ;;  %v933_v11 = vld [vmem:[%s1197_s1 + $0xa8] sm:$0xff]  }
   0x5   :  { %831 = vmatpush3.bf16.msra.mxu1 %v925_v3  ;;  %792 = vmatprep.subr.bf16.mxu0 %v926_v4  ;;  %v934_v12 = vld [vmem:[%s1197_s1 + $0x60] sm:$0xff]   ;;  %v938_v16 = vld [vmem:[%s1197_s1 + $0x58] sm:$0xff]   ;;  %v942_v20 = vld [vmem:[%s1197_s1 + $0x50] sm:$0xff]  }
   0x6   :  { %832 = vmatprep.subr.bf16.mxu1 %v927_v5  ;;  %v935_v13 = vld [vmem:[%s1197_s1 + $0xe0] sm:$0xff]   ;;  %v939_v17 = vld [vmem:[%s1197_s1 + $0xd8] sm:$0xff]   ;;  %v943_v21 = vld [vmem:[%s1197_s1 + $0xd0] sm:$0xff]  }
   0x7   :  { %v936_v14 = vld [vmem:[%s1197_s1 + $0x20] sm:$0xff]   ;;  %v940_v18 = vld [vmem:[%s1197_s1 + $0x18] sm:$0xff]   ;;  %v944_v22 = vld [vmem:[%s1197_s1 + $0x10] sm:$0xff]  }
   0x8   :  { %793 = vmatpush3.bf16.msra.mxu0 %v928_v6  ;;  %v937_v15 = vld [vmem:[%s1197_s1 + $0xa0] sm:$0xff]   ;;  %v941_v19 = vld [vmem:[%s1197_s1 + $0x98] sm:$0xff]   ;;  %v945_v23 = vld [vmem:[%s1197_s1 + $0x90] sm:$0xff]  }
   0x9   :  { %833 = vmatpush3.bf16.msra.mxu1 %v929_v7  ;;  %794 = vmatprep.subr.bf16.mxu0 %v930_v8  ;;  %v946_v24 = vld [vmem:[%s1197_s1 + $0x48] sm:$0xff]   ;;  %v950_v28 = vld [vmem:[%s1197_s1 + $0x40] sm:$0xff]   ;;  %v960_v36 = vld [vmem:[%s1197_s1 + $0x138] sm:$0xff]  }
   0xa   :  { %834 = vmatprep.subr.bf16.mxu1 %v931_v9  ;;  %v947_v25 = vld [vmem:[%s1197_s1 + $0xc8] sm:$0xff]   ;;  %v951_v29 = vld [vmem:[%s1197_s1 + $0xc0] sm:$0xff]   ;;  %v961_v37 = vld [vmem:[%s1197_s1 + $0x130] sm:$0xff]  }
   0xb   :  { %v948_v26 = vld [vmem:[%s1197_s1 + $0x8] sm:$0xff]   ;;  %v952_v30 = vld [vmem:[%s1197_s1] sm:$0xff]   ;;  %v972_v45 = vld [vmem:[%s1198_s0 + $0x5c] ss:$20 sps:$4 sm:$0xff]  }
   0xc   :  { %795 = vmatpush3.bf16.msra.mxu0 %v932_v10  ;;  %v949_v27 = vld [vmem:[%s1197_s1 + $0x88] sm:$0xff]   ;;  %v953_v31 = vld [vmem:[%s1197_s1 + $0x80] sm:$0xff]   ;;  %v976_v46 = vld [vmem:[%s1197_s1 + $0x118] sm:$0xff]  }
   0xd   :  { %835 = vmatpush3.bf16.msra.mxu1 %v933_v11  ;;  %796 = vmatprep.subr.bf16.mxu0 %v934_v12  ;;  %v954_v32 = vld [vmem:[%s1198_s0] ss:$20 sps:$4 sm:$0xff]   ;;  %v956_v33 = vld [vmem:[%s1198_s0 + $0x4] ss:$20 sps:$4 sm:$0xff]   ;;  %v957_v34 = vld [vmem:[%s1198_s0 + $0x8] ss:$20 sps:$4 sm:$0xff]  }
   0xe   :  { %836 = vmatprep.subr.bf16.mxu1 %v935_v13  ;;  %v959_v35 = vld [vmem:[%s1198_s0 + $0xc] ss:$20 sps:$4 sm:$0xff]   ;;  %491 = vmatprep.mubr.bf16.mxu0 %v956_v33  ;;  %v964_v39 = vld [vmem:[%s1198_s0 + $0x34] ss:$20 sps:$4 sm:$0xff]   ;;  %v967_v42 = vld [vmem:[%s1198_s0 + $0x30] ss:$20 sps:$4 sm:$0xff]  }
   0xf   :  { %555 = vmatprep.mubr.bf16.mxu1 %v959_v35  ;;  %v962_v38 = vld [vmem:[%s1198_s0 + $0x2c] ss:$20 sps:$4 sm:$0xff]   ;;  %v966_v40 = vld [vmem:[%s1198_s0 + $0x28] ss:$20 sps:$4 sm:$0xff]   ;;  %v974_v49 = vld [vmem:[%s1198_s0 + $0x50] ss:$20 sps:$4 sm:$0xff]  }
  0x10   :  { %797 = vmatpush3.bf16.msra.mxu0 %v936_v14  ;;  %v968_v41 = vld [vmem:[%s1197_s1 + $0x128] sm:$0xff]   ;;  %v969_v44 = vld [vmem:[%s1197_s1 + $0x120] sm:$0xff]   ;;  %v33_v47 = vld [vmem:[%s1198_s0 + $0x78] sm:$0xff] }
  0x11   :  { %837 = vmatpush3.bf16.msra.mxu1 %v937_v15  ;;  %798 = vmatprep.subr.bf16.mxu0 %v938_v16  ;;  %v970_v43 = vld [vmem:[%s1198_s0 + $0x54] ss:$20 sps:$4 sm:$0xff]   ;;  %v34_v48 = vld [vmem:[%s1198_s0 + $0x80] sm:$0xff]  ;;  %v975_v50 = vld [vmem:[%s1198_s0 + $0x58] ss:$20 sps:$4 sm:$0xff]   ;;  %v715_v51 = vcombine.high %v33_v47, %v33_v47  ;;  %v714_v55 = vcombine.low %v33_v47, %v33_v47 }
  0x12   :  { %838 = vmatprep.subr.bf16.mxu1 %v939_v17  ;;  %v717_v52 = vcombine.high %v34_v48, %v34_v48  ;;  %v977_v53 = vld [vmem:[%s1197_s1 + $0x110] sm:$0xff]   ;;  %v982_v54 = vld [vmem:[%s1197_s1 + $0x108] sm:$0xff]   ;;  %v716_v56 = vcombine.low %v34_v48, %v34_v48  ;;  %v983_v59 = vld [vmem:[%s1197_s1 + $0x100] sm:$0xff]  }
  0x13   :  { %v984_v57 = vld [vmem:[%s1198_s0 + $0x10] ss:$20 sps:$4 sm:$0xff]   ;;  %v985_v58 = vld [vmem:[%s1198_s0 + $0x60] ss:$20 sps:$4 sm:$0xff]   ;;  %v986_v60 = vld [vmem:[%s1198_s0 + $0x38] ss:$20 sps:$4 sm:$0xff]  }
  0x14   :  { %799 = vmatpush3.bf16.msra.mxu0 %v940_v18  ;;  %v987_v61 = vld [vmem:[%s1198_s0 + $0x88] ss:$0 sps:$4 sm:$0xff]  }
  0x15   :  { %839 = vmatpush3.bf16.msra.mxu1 %v941_v19  ;;  %800 = vmatprep.subr.bf16.mxu0 %v942_v20 }
  0x16   :  { %840 = vmatprep.subr.bf16.mxu1 %v943_v21 }
  0x18   :  { %801 = vmatpush3.bf16.msra.mxu0 %v944_v22 }
  0x19   :  { %841 = vmatpush3.bf16.msra.mxu1 %v945_v23  ;;  %802 = vmatprep.subr.bf16.mxu0 %v946_v24 }
  0x1a   :  { %842 = vmatprep.subr.bf16.mxu1 %v947_v25 }
  0x1c   :  { %803 = vmatpush3.bf16.msra.mxu0 %v948_v26 }
  0x1d   :  { %843 = vmatpush3.bf16.msra.mxu1 %v949_v27  ;;  %804 = vmatprep.subr.bf16.mxu0 %v950_v28  ;;  %v698_v28 = vld [vmem:[%s1199_s2] ss:$0 sm:$0xff] }
  0x1e   :  { %844 = vmatprep.subr.bf16.mxu1 %v951_v29 }
  0x20   :  { %805 = vmatpush3.bf16.msra.mxu0 %v952_v30 }
  0x21   :  { %845 = vmatpush3.bf16.msra.mxu1 %v953_v31  ;;  %882 = vmatprep.subr.bf16.mxu0 %v960_v36 }
  0x22   :  { %906 = vmatprep.subr.bf16.mxu1 %v960_v36 }
  0x23   :  { %492 = vmatmul.mubr.bf16.vlgmr.msra.gmra.mxu0 %v954_v32 }
  0x24   :  { %556 = vmatmul.mubr.bf16.vlgmr.msra.gmra.mxu1 %v957_v34  ;;  %883 = vmatpush3.bf16.msra.mxu0 %v960_v36 }
  0x25   :  { %914 = vmatpush3.bf16.msra.mxu1 %v960_v36  ;;  %884 = vmatprep.subr.bf16.mxu0 %v961_v37 }
  0x26   :  { %907 = vmatprep.subr.bf16.mxu1 %v961_v37  ;;  %499 = vmatprep.mubr.bf16.mxu0 %v962_v38 }
  0x27   :  { %563 = vmatprep.mubr.bf16.mxu1 %v964_v39 }
  0x28   :  { %885 = vmatpush3.bf16.msra.mxu0 %v961_v37 }
  0x29   :  { %915 = vmatpush3.bf16.msra.mxu1 %v961_v37  ;;  %886 = vmatprep.subr.bf16.mxu0 %v968_v41 }
  0x2a   :  { %908 = vmatprep.subr.bf16.mxu1 %v968_v41 }
  0x2b   :  { %500 = vmatmul.mubr.bf16.gmra.mxu0 %v966_v40 }
  0x2c   :  { %564 = vmatmul.mubr.bf16.gmra.mxu1 %v967_v42  ;;  %507 = vmatprep.mubr.bf16.mxu0 %v970_v43 }
  0x2d   :  { %887 = vmatpush3.bf16.msra.mxu0 %v968_v41  ;;  %571 = vmatprep.mubr.bf16.mxu1 %v972_v45 }
  0x2e   :  { %916 = vmatpush3.bf16.msra.mxu1 %v968_v41  ;;  %888 = vmatprep.subr.bf16.mxu0 %v969_v44 }
  0x2f   :  { %909 = vmatprep.subr.bf16.mxu1 %v969_v44 }
  0x31   :  { %889 = vmatpush3.bf16.msra.mxu0 %v969_v44 }
  0x32   :  { %917 = vmatpush3.bf16.msra.mxu1 %v969_v44  ;;  %890 = vmatprep.subr.bf16.mxu0 %v976_v46 }
  0x33   :  { %508 = vmatmul.mubr.bf16.gmra.mxu0 %v974_v49  ;;  %910 = vmatprep.subr.bf16.mxu1 %v976_v46 }
  0x34   :  { %572 = vmatmul.mubr.bf16.gmra.mxu1 %v975_v50  ;;  %515 = vmatprep.mubr.bf16.mxu0 %v715_v51 }
  0x35   :  { %891 = vmatpush3.bf16.msra.mxu0 %v976_v46  ;;  %579 = vmatprep.mubr.bf16.mxu1 %v717_v52 }
  0x36   :  { %918 = vmatpush3.bf16.msra.mxu1 %v976_v46  ;;  %892 = vmatprep.subr.bf16.mxu0 %v977_v53 }
  0x37   :  { %911 = vmatprep.subr.bf16.mxu1 %v977_v53 }
  0x39   :  { %893 = vmatpush3.bf16.msra.mxu0 %v977_v53 }
  0x3a   :  { %919 = vmatpush3.bf16.msra.mxu1 %v977_v53  ;;  %894 = vmatprep.subr.bf16.mxu0 %v982_v54 }
  0x3b   :  { %516 = vmatmul.mubr.bf16.gmra.mxu0 %v714_v55  ;;  %912 = vmatprep.subr.bf16.mxu1 %v982_v54 }
  0x3c   :  { %580 = vmatmul.mubr.bf16.gmra.mxu1 %v716_v56  ;;  %898 = vmatprep.mubr.bf16.mxu0 %v984_v57 }
  0x3d   :  { %895 = vmatpush3.bf16.msra.mxu0 %v982_v54  ;;  %902 = vmatprep.mubr.bf16.mxu1 %v985_v58 }
  0x3e   :  { %920 = vmatpush3.bf16.msra.mxu1 %v982_v54  ;;  %896 = vmatprep.subr.bf16.mxu0 %v983_v59 }
  0x3f   :  { %913 = vmatprep.subr.bf16.mxu1 %v983_v59 }
  0x41   :  { %897 = vmatpush3.bf16.msra.mxu0 %v983_v59 }
  0x42   :  { %921 = vmatpush3.bf16.msra.mxu1 %v983_v59 }
  0x44   :  { %899 = vmatmul.mubr.bf16.vlgmr.msra.gmra.mxu0 %v986_v60 }
  0x45   :  { %903 = vmatmul.mubr.bf16.vlgmr.msra.gmra.mxu1 %v987_v61 }
  0xe3   :  { %v806_v62 = vpop.f32.mrf.mxu0 }
  0xe4   :  { %v846_v63 = vpop.f32.mrf.mxu1 }
  0xe5   :  { %v807_v0 = vpop.f32.mrf.mxu0 }
  0xe6   :  { %v847_v1 = vpop.f32.mrf.mxu1  ;;  %v808_v29 = vadd.f32 %v807_v0, %v806_v62 }
  0xe7   :  { %v809_v2 = vpop.f32.mrf.mxu0  ;;  %v848_v47 = vadd.f32 %v847_v1, %v846_v63 }
  0xe8   :  { %v849_v3 = vpop.f32.mrf.mxu1  ;;  %v494_v42 = vadd.f32 %v808_v29, %v698_v28 }
  0xe9   :  { %v810_v4 = vpop.f32.mrf.mxu0 }
  0xea   :  { %v850_v5 = vpop.f32.mrf.mxu1  ;;  %v811_v36 = vadd.f32 %v810_v4, %v809_v2  ;;  %v558_v58 = vadd.f32 %v848_v47, %v494_v42 }
  0xeb   :  { %v812_v6 = vpop.f32.mrf.mxu0  ;;  %v851_v56 = vadd.f32 %v850_v5, %v849_v3 }
  0xec   :  { %v852_v7 = vpop.f32.mrf.mxu1  ;;  %v497_v48 = vadd.f32 %v811_v36, %v698_v28 }
  0xed   :  { %v813_v8 = vpop.f32.mrf.mxu0 }
  0xee   :  { %v853_v9 = vpop.f32.mrf.mxu1  ;;  %v814_v24 = vadd.f32 %v813_v8, %v812_v6  ;;  %v561_v1 = vadd.f32 %v851_v56, %v497_v48 }
  0xef   :  { %v815_v10 = vpop.f32.mrf.mxu0  ;;  %v854_v43 = vadd.f32 %v853_v9, %v852_v7 }
  0xf0   :  { %v855_v11 = vpop.f32.mrf.mxu1  ;;  %v502_v37 = vadd.f32 %v814_v24, %v698_v28 }
  0xf1   :  { %v816_v12 = vpop.f32.mrf.mxu0 }
  0xf2   :  { %v856_v13 = vpop.f32.mrf.mxu1  ;;  %v817_v30 = vadd.f32 %v816_v12, %v815_v10  ;;  %v566_v50 = vadd.f32 %v854_v43, %v502_v37 }
  0xf3   :  { %v818_v14 = vpop.f32.mrf.mxu0  ;;  %v857_v49 = vadd.f32 %v856_v13, %v855_v11 }
  0xf4   :  { %v858_v15 = vpop.f32.mrf.mxu1  ;;  %v505_v44 = vadd.f32 %v817_v30, %v698_v28 }
  0xf5   :  { %v819_v16 = vpop.f32.mrf.mxu0 }
  0xf6   :  { %v859_v17 = vpop.f32.mrf.mxu1  ;;  %v820_v32 = vadd.f32 %v819_v16, %v818_v14  ;;  %v569_v60 = vadd.f32 %v857_v49, %v505_v44 }
  0xf7   :  { %v821_v18 = vpop.f32.mrf.mxu0  ;;  %v860_v52 = vadd.f32 %v859_v17, %v858_v15 }
  0xf8   :  { %v861_v19 = vpop.f32.mrf.mxu1  ;;  %v510_v45 = vadd.f32 %v820_v32, %v698_v28 }
  0xf9   :  { %v822_v20 = vpop.f32.mrf.mxu0 }
  0xfa   :  { %v862_v21 = vpop.f32.mrf.mxu1  ;;  %v823_v39 = vadd.f32 %v822_v20, %v821_v18  ;;  %v574_v0 = vadd.f32 %v860_v52, %v510_v45 }
  0xfb   :  { %v824_v22 = vpop.f32.mrf.mxu0  ;;  %v863_v61 = vadd.f32 %v862_v21, %v861_v19 }
  0xfc   :  { %v864_v23 = vpop.f32.mrf.mxu1  ;;  %v513_v53 = vadd.f32 %v823_v39, %v698_v28 }
  0xfd   :  { %v825_v25 = vpop.f32.mrf.mxu0 }
  0xfe   :  { %v826_v26 = vadd.f32 %v825_v25, %v824_v22  ;;  %v865_v27 = vpop.f32.mrf.mxu1  ;;  %v577_v10 = vadd.f32 %v863_v61, %v513_v53 }
  0xff   :  { %v827_v31 = vpop.f32.mrf.mxu0  ;;  %v866_v34 = vadd.f32 %v865_v27, %v864_v23 }
 0x100   :  { %v518_v33 = vadd.f32 %v826_v26, %v698_v28  ;;  %v867_v35 = vpop.f32.mrf.mxu1 }
 0x101   :  { %v828_v38 = vpop.f32.mrf.mxu0 }
 0x102   :  { %v868_v40 = vpop.f32.mrf.mxu1  ;;  %v582_v41 = vadd.f32 %v866_v34, %v518_v33 }
 0x104   :  { %v900_v46 = vpop.f32.mrf.mxu0 }
 0x105   :  { %v904_v51 = vpop.f32.mrf.mxu1  ;;  %v630_v57 = vadd.f32 %v900_v46, %v566_v50 }
 0x106   :  { %v646_v54 = vadd.f32 %v904_v51, %v582_v41  ;;  %v621_v55 = vpop.f32.mrf.mxu0 }
 0x107   :  { %v637_v59 = vpop.f32.mrf.mxu1  ;;  %v622_v4 = vadd.f32 %v621_v55, %v558_v58  ;;  %v653_v11 = vmax.f32 %v630_v57, 0.0 }
 0x108   :  { %v657_v62 = vmax.f32 %v646_v54, 0.0  ;;  %v901_v2 = vpop.f32.mrf.mxu0  ;;  %v638_v8 = vadd.f32 %v637_v59, %v574_v0 }
 0x109   :  { %v633_v6 = vadd.f32 %v901_v2, %v569_v60  ;;  %v905_v63 = vpop.f32.mrf.mxu1  ;;  %v651_v14 = vmax.f32 %v622_v4, 0.0 }
 0x10a   :  { %v772_v7 = vpack.c.bf16 %v657_v62, %v657_v62  ;;  %v624_v9 = vpop.f32.mrf.mxu0  ;;  %v655_v17 = vmax.f32 %v638_v8, 0.0 }
 0x10b   :  { %v654_v12 = vmax.f32 %v633_v6, 0.0  ;;  %v625_v13 = vadd.f32 %v624_v9, %v561_v1  ;;  %v640_v3 = vpop.f32.mrf.mxu1 }
 0x10c   :  { %693 = vst [vmem:[%s1200_s3 + $0x18] sm:$0xf] %v772_v7  ;;  %v641_v5 = vadd.f32 %v640_v3, %v577_v10 }
 0x10d   :  { %v781_v15 = vpack.c.bf16 %v654_v12, %v653_v11  ;;  %v652_v16 = vmax.f32 %v625_v13, 0.0 }
 0x10e   :  { %v656_v18 = vmax.f32 %v641_v5, 0.0 }
 0x10f   :  { %788 = vst [vmem:[%s1200_s3 + $0x8] sm:$0xff] %v781_v15   ;;  %v776_v19 = vpack.c.bf16 %v652_v16, %v651_v14 }
 0x110   :  { %v786_v20 = vpack.c.bf16 %v656_v18, %v655_v17 }
 0x111   :  { %777 = vst [vmem:[%s1200_s3] sm:$0xff] %v776_v19  }
 0x112   :  { %789 = vst [vmem:[%s1200_s3 + $0x10] sm:$0xff] %v786_v20  }

// kernel: netv1_forward.7
= control target key start
LH: loop header
LB: loop body
LE: loop exit
PB: predicated region body
PF: predicated region fallthrough
CT: control target
= control target key end

     0   :  { %vm3008_vm0 = vmmov 0   ;;  %s3674_s1 = inlined_call_operand.vmem [shape: bf16[3200,128], index: 1, kind: input, shape index: {}]   ;;  %s3675_s0 = inlined_call_operand.vmem [shape: bf16[8,3200], index: 0, kind: input, shape index: {}]   ;;  %s3676_s2 = inlined_call_operand.vmem [shape: f32[1,128], index: 2, kind: input, shape index: {}]   ;;  %s3677_s3 = inlined_call_operand.vmem [shape: f32[8,128], index: 3, kind: output, shape index: {}]  }
   0x1   :  { %v2778_v0 = vld [vmem:[%s3674_s1 + $0x78] sm:$0xff]   ;;  %v2782_v4 = vld [vmem:[%s3674_s1 + $0x70] sm:$0xff]   ;;  %v2786_v8 = vld [vmem:[%s3674_s1 + $0x68] sm:$0xff]  }
   0x2   :  { %v2779_v1 = vld [vmem:[%s3674_s1 + $0x38] sm:$0xff]   ;;  %2483 = vmatprep.subr.bf16.mxu0 %v2778_v0  ;;  %v2783_v5 = vld [vmem:[%s3674_s1 + $0x30] sm:$0xff]   ;;  %v2787_v9 = vld [vmem:[%s3674_s1 + $0x28] sm:$0xff]  }
   0x3   :  { %v2780_v2 = vld [vmem:[%s3674_s1 + $0xf8] sm:$0xff]   ;;  %2484 = vmatpush3.bf16.msra.mxu0 %v2779_v1  ;;  %v2784_v6 = vld [vmem:[%s3674_s1 + $0xf0] sm:$0xff]   ;;  %v2788_v10 = vld [vmem:[%s3674_s1 + $0xe8] sm:$0xff]  }
   0x4   :  { %v2781_v3 = vld [vmem:[%s3674_s1 + $0xb8] sm:$0xff]   ;;  %2505 = vmatprep.subr.bf16.mxu1 %v2780_v2  ;;  %2485 = vmatprep.subr.bf16.mxu0 %v2782_v4  ;;  %v2785_v7 = vld [vmem:[%s3674_s1 + $0xb0] sm:$0xff]   ;;  %v2789_v11 = vld [vmem:[%s3674_s1 + $0xa8] sm:$0xff]  }
   0x5   :  { %2506 = vmatpush3.bf16.msra.mxu1 %v2781_v3  ;;  %v2790_v12 = vld [vmem:[%s3674_s1 + $0x60] sm:$0xff]   ;;  %v2794_v16 = vld [vmem:[%s3674_s1 + $0x58] sm:$0xff]   ;;  %v2798_v20 = vld [vmem:[%s3674_s1 + $0x50] sm:$0xff]  }
   0x6   :  { %2507 = vmatprep.subr.bf16.mxu1 %v2784_v6  ;;  %v2791_v13 = vld [vmem:[%s3674_s1 + $0x20] sm:$0xff]   ;;  %v2795_v17 = vld [vmem:[%s3674_s1 + $0x18] sm:$0xff]   ;;  %v2799_v21 = vld [vmem:[%s3674_s1 + $0x10] sm:$0xff]  }
   0x7   :  { %2486 = vmatpush3.bf16.msra.mxu0 %v2783_v5  ;;  %v2792_v14 = vld [vmem:[%s3674_s1 + $0xe0] sm:$0xff]   ;;  %v2796_v18 = vld [vmem:[%s3674_s1 + $0xd8] sm:$0xff]   ;;  %v2800_v22 = vld [vmem:[%s3674_s1 + $0xd0] sm:$0xff]  }
   0x8   :  { %2487 = vmatprep.subr.bf16.mxu0 %v2786_v8  ;;  %v2793_v15 = vld [vmem:[%s3674_s1 + $0xa0] sm:$0xff]   ;;  %v2797_v19 = vld [vmem:[%s3674_s1 + $0x98] sm:$0xff]   ;;  %v2801_v23 = vld [vmem:[%s3674_s1 + $0x90] sm:$0xff]  }
   0x9   :  { %2508 = vmatpush3.bf16.msra.mxu1 %v2785_v7  ;;  %v2802_v24 = vld [vmem:[%s3674_s1 + $0x48] sm:$0xff]   ;;  %v2806_v28 = vld [vmem:[%s3674_s1 + $0x40] sm:$0xff]   ;;  %v2812_v35 = vld [vmem:[%s3674_s1 + $0x178] sm:$0xff]  }
   0xa   :  { %2509 = vmatprep.subr.bf16.mxu1 %v2788_v10  ;;  %v2803_v25 = vld [vmem:[%s3674_s1 + $0x8] sm:$0xff]   ;;  %v2807_v29 = vld [vmem:[%s3674_s1] sm:$0xff]   ;;  %v2815_v39 = vld [vmem:[%s3674_s1 + $0x138] sm:$0xff]  }
   0xb   :  { %2488 = vmatpush3.bf16.msra.mxu0 %v2787_v9  ;;  %v2804_v26 = vld [vmem:[%s3674_s1 + $0xc8] sm:$0xff]   ;;  %v2808_v30 = vld [vmem:[%s3674_s1 + $0xc0] sm:$0xff]   ;;  %v2816_v40 = vld [vmem:[%s3674_s1 + $0x1f8] sm:$0xff]  }
   0xc   :  { %2489 = vmatprep.subr.bf16.mxu0 %v2790_v12  ;;  %v2805_v27 = vld [vmem:[%s3674_s1 + $0x88] sm:$0xff]   ;;  %v15_v31 = vld [vmem:[%s3675_s0] sm:$0xff]  ;;  %v2817_v41 = vld [vmem:[%s3674_s1 + $0x1b8] sm:$0xff]  }
   0xd   :  { %2510 = vmatpush3.bf16.msra.mxu1 %v2789_v11  ;;  %v2258_v32 = vcombine.low %v15_v31, %v15_v31  ;;  %v2259_v33 = vcombine.high %v15_v31, %v15_v31  ;;  %v2811_v34 = vld [vmem:[%s3674_s1 + $0x80] sm:$0xff]   ;;  %v16_v36 = vld [vmem:[%s3675_s0 + $0x8] sm:$0xff]  ;;  %v2818_v42 = vld [vmem:[%s3674_s1 + $0x170] sm:$0xff]  }
   0xe   :  { %2511 = vmatprep.subr.bf16.mxu1 %v2792_v14  ;;  %v2260_v37 = vcombine.low %v16_v36, %v16_v36  ;;  %v2261_v38 = vcombine.high %v16_v36, %v16_v36  ;;  %v2819_v43 = vld [vmem:[%s3674_s1 + $0x130] sm:$0xff]   ;;  %v2822_v46 = vld [vmem:[%s3674_s1 + $0x168] sm:$0xff]   ;;  %v2826_v50 = vld [vmem:[%s3674_s1 + $0x160] sm:$0xff]  }
   0xf   :  { %2490 = vmatpush3.bf16.msra.mxu0 %v2791_v13  ;;  %1755 = vmatprep.mubr.bf16.mxu0 %v2259_v33  ;;  %v2820_v44 = vld [vmem:[%s3674_s1 + $0x1f0] sm:$0xff]   ;;  %v2823_v47 = vld [vmem:[%s3674_s1 + $0x128] sm:$0xff]   ;;  %v2827_v51 = vld [vmem:[%s3674_s1 + $0x120] sm:$0xff]  }
  0x10   :  { %2491 = vmatprep.subr.bf16.mxu0 %v2794_v16  ;;  %1795 = vmatprep.mubr.bf16.mxu1 %v2261_v38  ;;  %v2821_v45 = vld [vmem:[%s3674_s1 + $0x1b0] sm:$0xff]   ;;  %v2824_v48 = vld [vmem:[%s3674_s1 + $0x1e8] sm:$0xff]   ;;  %v2828_v52 = vld [vmem:[%s3674_s1 + $0x1e0] sm:$0xff]  }
  0x11   :  { %2512 = vmatpush3.bf16.msra.mxu1 %v2793_v15  ;;  %v2825_v49 = vld [vmem:[%s3674_s1 + $0x1a8] sm:$0xff]   ;;  %v2829_v53 = vld [vmem:[%s3674_s1 + $0x1a0] sm:$0xff]   ;;  %v2830_v54 = vld [vmem:[%s3674_s1 + $0x158] sm:$0xff]  }
  0x12   :  { %2513 = vmatprep.subr.bf16.mxu1 %v2796_v18  ;;  %v2831_v55 = vld [vmem:[%s3674_s1 + $0x118] sm:$0xff]   ;;  %v2834_v58 = vld [vmem:[%s3674_s1 + $0x150] sm:$0xff]   ;;  %v2838_v62 = vld [vmem:[%s3674_s1 + $0x148] sm:$0xff]  }
  0x13   :  { %2492 = vmatpush3.bf16.msra.mxu0 %v2795_v17  ;;  %v2832_v56 = vld [vmem:[%s3674_s1 + $0x1d8] sm:$0xff]   ;;  %v2835_v59 = vld [vmem:[%s3674_s1 + $0x110] sm:$0xff]   ;;  %v2839_v63 = vld [vmem:[%s3674_s1 + $0x108] sm:$0xff]  }
  0x14   :  { %2493 = vmatprep.subr.bf16.mxu0 %v2798_v20  ;;  %v2833_v57 = vld [vmem:[%s3674_s1 + $0x198] sm:$0xff]   ;;  %v2836_v60 = vld [vmem:[%s3674_s1 + $0x1d0] sm:$0xff]   ;;  %v2840_v0 = vld [vmem:[%s3674_s1 + $0x1c8] sm:$0xff]  }
  0x15   :  { %2514 = vmatpush3.bf16.msra.mxu1 %v2797_v19  ;;  %v2837_v61 = vld [vmem:[%s3674_s1 + $0x190] sm:$0xff]   ;;  %v2841_v1 = vld [vmem:[%s3674_s1 + $0x188] sm:$0xff]   ;;  %v2842_v2 = vld [vmem:[%s3674_s1 + $0x140] sm:$0xff]  }
  0x16   :  { %2515 = vmatprep.subr.bf16.mxu1 %v2800_v22  ;;  %v2843_v3 = vld [vmem:[%s3674_s1 + $0x100] sm:$0xff]   ;;  %v17_v5 = vld [vmem:[%s3675_s0 + $0x10] sm:$0xff]  ;;  %v2848_v9 = vld [vmem:[%s3674_s1 + $0x278] sm:$0xff]  }
  0x17   :  { %2494 = vmatpush3.bf16.msra.mxu0 %v2799_v21  ;;  %v2844_v4 = vld [vmem:[%s3674_s1 + $0x1c0] sm:$0xff]   ;;  %v2262_v6 = vcombine.low %v17_v5, %v17_v5  ;;  %v2263_v7 = vcombine.high %v17_v5, %v17_v5  ;;  %v18_v10 = vld [vmem:[%s3675_s0 + $0x18] sm:$0xff]  ;;  %v2854_v16 = vld [vmem:[%s3674_s1 + $0x270] sm:$0xff]  }
  0x18   :  { %2495 = vmatprep.subr.bf16.mxu0 %v2802_v24  ;;  %v2847_v8 = vld [vmem:[%s3674_s1 + $0x180] sm:$0xff]   ;;  %v2264_v11 = vcombine.low %v18_v10, %v18_v10  ;;  %v2265_v12 = vcombine.high %v18_v10, %v18_v10  ;;  %v2851_v13 = vld [vmem:[%s3674_s1 + $0x238] sm:$0xff]   ;;  %v2855_v17 = vld [vmem:[%s3674_s1 + $0x230] sm:$0xff]  }
  0x19   :  { %2516 = vmatpush3.bf16.msra.mxu1 %v2801_v23  ;;  %v2852_v14 = vld [vmem:[%s3674_s1 + $0x2f8] sm:$0xff]   ;;  %v2856_v18 = vld [vmem:[%s3674_s1 + $0x2f0] sm:$0xff]   ;;  %v2858_v20 = vld [vmem:[%s3674_s1 + $0x268] sm:$0xff]  }
  0x1a   :  { %2517 = vmatprep.subr.bf16.mxu1 %v2804_v26  ;;  %v2853_v15 = vld [vmem:[%s3674_s1 + $0x2b8] sm:$0xff]   ;;  %v2857_v19 = vld [vmem:[%s3674_s1 + $0x2b0] sm:$0xff]   ;;  %v2859_v21 = vld [vmem:[%s3674_s1 + $0x228] sm:$0xff]  }
  0x1b   :  { %2496 = vmatpush3.bf16.msra.mxu0 %v2803_v25  ;;  %v2860_v22 = vld [vmem:[%s3674_s1 + $0x2e8] sm:$0xff]   ;;  %v2862_v24 = vld [vmem:[%s3674_s1 + $0x260] sm:$0xff]   ;;  %v2869_v31 = vld [vmem:[%s3674_s1 + $0x298] sm:$0xff]  }
  0x1c   :  { %2497 = vmatprep.subr.bf16.mxu0 %v2806_v28  ;;  %v2861_v23 = vld [vmem:[%s3674_s1 + $0x2a8] sm:$0xff]   ;;  %v2863_v25 = vld [vmem:[%s3674_s1 + $0x220] sm:$0xff]   ;;  %v2866_v28 = vld [vmem:[%s3674_s1 + $0x258] sm:$0xff]  }
  0x1d   :  { %2518 = vmatpush3.bf16.msra.mxu1 %v2805_v27  ;;  %v2864_v26 = vld [vmem:[%s3674_s1 + $0x2e0] sm:$0xff]   ;;  %v2871_v33 = vld [vmem:[%s3674_s1 + $0x210] sm:$0xff]   ;;  %v2874_v36 = vld [vmem:[%s3674_s1 + $0x248] sm:$0xff]  }
  0x1e   :  { %2519 = vmatprep.subr.bf16.mxu1 %v2808_v30  ;;  %v2865_v27 = vld [vmem:[%s3674_s1 + $0x2a0] sm:$0xff]   ;;  %v2868_v30 = vld [vmem:[%s3674_s1 + $0x2d8] sm:$0xff]   ;;  %v2876_v38 = vld [vmem:[%s3674_s1 + $0x2c8] sm:$0xff]  }
  0x1f   :  { %2498 = vmatpush3.bf16.msra.mxu0 %v2807_v29  ;;  %v2867_v29 = vld [vmem:[%s3674_s1 + $0x218] sm:$0xff]   ;;  %v2910_v10 = vld [vmem:[%s3674_s1 + $0x348] sm:$0xff]  }
  0x20   :  { %2527 = vmatprep.subr.bf16.mxu0 %v2812_v35  ;;  %v2873_v35 = vld [vmem:[%s3674_s1 + $0x290] sm:$0xff]   ;;  %v2905_v5 = vld [vmem:[%s3674_s1 + $0x398] sm:$0xff]  }
  0x21   :  { %2520 = vmatpush3.bf16.msra.mxu1 %v2811_v34  ;;  %v2872_v34 = vld [vmem:[%s3674_s1 + $0x2d0] sm:$0xff]  }
  0x22   :  { %1756 = vmatmul.mubr.bf16.vlgmr.msra.gmra.mxu0 %v2258_v32  ;;  %2549 = vmatprep.subr.bf16.mxu1 %v2816_v40  ;;  %v2870_v32 = vld [vmem:[%s3674_s1 + $0x250] sm:$0xff]   ;;  %v2878_v40 = vld [vmem:[%s3674_s1 + $0x240] sm:$0xff]  }
  0x23   :  { %2528 = vmatpush3.bf16.msra.mxu0 %v2815_v39  ;;  %1835 = vmatprep.mubr.bf16.mxu0 %v2263_v7  ;;  %v2877_v39 = vld [vmem:[%s3674_s1 + $0x288] sm:$0xff]   ;;  %v2907_v7 = vld [vmem:[%s3674_s1 + $0x310] sm:$0xff]  }
  0x24   :  { %1796 = vmatmul.mubr.bf16.vlgmr.msra.gmra.mxu1 %v2260_v37  ;;  %2529 = vmatprep.subr.bf16.mxu0 %v2818_v42  ;;  %v2875_v37 = vld [vmem:[%s3674_s1 + $0x208] sm:$0xff]   ;;  %v2880_v42 = vld [vmem:[%s3674_s1 + $0x2c0] sm:$0xff]  }
  0x25   :  { %2550 = vmatpush3.bf16.msra.mxu1 %v2817_v41  ;;  %1875 = vmatprep.mubr.bf16.mxu1 %v2265_v12  ;;  %v2879_v41 = vld [vmem:[%s3674_s1 + $0x200] sm:$0xff]   ;;  %v2912_v12 = vld [vmem:[%s3674_s1 + $0x3c8] sm:$0xff]  }
  0x26   :  { %2551 = vmatprep.subr.bf16.mxu1 %v2820_v44 }
  0x27   :  { %2530 = vmatpush3.bf16.msra.mxu0 %v2819_v43  ;;  %v19_v43 = vld [vmem:[%s3675_s0 + $0x20] sm:$0xff] }
  0x28   :  { %2531 = vmatprep.subr.bf16.mxu0 %v2822_v46  ;;  %v2266_v44 = vcombine.low %v19_v43, %v19_v43  ;;  %v2883_v46 = vld [vmem:[%s3674_s1 + $0x280] sm:$0xff]  }
  0x29   :  { %2552 = vmatpush3.bf16.msra.mxu1 %v2821_v45  ;;  %v2267_v45 = vcombine.high %v19_v43, %v19_v43  ;;  %v2941_v43 = vld [vmem:[%s3674_s1 + $0x498] sm:$0xff]  }
  0x2a   :  { %2553 = vmatprep.subr.bf16.mxu1 %v2824_v48  ;;  %v20_v48 = vld [vmem:[%s3675_s0 + $0x28] sm:$0xff] }
  0x2b   :  { %2532 = vmatpush3.bf16.msra.mxu0 %v2823_v47  ;;  %v2884_v47 = vld [vmem:[%s3674_s1 + $0x378] sm:$0xff]  }
  0x2c   :  { %2533 = vmatprep.subr.bf16.mxu0 %v2826_v50  ;;  %v2269_v50 = vcombine.high %v20_v48, %v20_v48 }
  0x2d   :  { %2554 = vmatpush3.bf16.msra.mxu1 %v2825_v49  ;;  %v2268_v49 = vcombine.low %v20_v48, %v20_v48  ;;  %v2946_v48 = vld [vmem:[%s3674_s1 + $0x448] sm:$0xff]  }
  0x2e   :  { %2555 = vmatprep.subr.bf16.mxu1 %v2828_v52  ;;  %v2888_v52 = vld [vmem:[%s3674_s1 + $0x3f8] sm:$0xff]  }
  0x2f   :  { %2534 = vmatpush3.bf16.msra.mxu0 %v2827_v51  ;;  %v2887_v51 = vld [vmem:[%s3674_s1 + $0x338] sm:$0xff]  }
  0x30   :  { %2535 = vmatprep.subr.bf16.mxu0 %v2830_v54  ;;  %v2890_v54 = vld [vmem:[%s3674_s1 + $0x370] sm:$0xff]  }
  0x31   :  { %2556 = vmatpush3.bf16.msra.mxu1 %v2829_v53  ;;  %v2889_v53 = vld [vmem:[%s3674_s1 + $0x3b8] sm:$0xff]  }
  0x32   :  { %2557 = vmatprep.subr.bf16.mxu1 %v2832_v56  ;;  %v2892_v56 = vld [vmem:[%s3674_s1 + $0x3f0] sm:$0xff]  }
  0x33   :  { %2536 = vmatpush3.bf16.msra.mxu0 %v2831_v55  ;;  %v2891_v55 = vld [vmem:[%s3674_s1 + $0x330] sm:$0xff]  }
  0x34   :  { %2537 = vmatprep.subr.bf16.mxu0 %v2834_v58  ;;  %v2894_v58 = vld [vmem:[%s3674_s1 + $0x368] sm:$0xff]  }
  0x35   :  { %2558 = vmatpush3.bf16.msra.mxu1 %v2833_v57  ;;  %v2893_v57 = vld [vmem:[%s3674_s1 + $0x3b0] sm:$0xff]  }
  0x36   :  { %2559 = vmatprep.subr.bf16.mxu1 %v2836_v60  ;;  %v2896_v60 = vld [vmem:[%s3674_s1 + $0x3e8] sm:$0xff]  }
  0x37   :  { %2538 = vmatpush3.bf16.msra.mxu0 %v2835_v59  ;;  %v2895_v59 = vld [vmem:[%s3674_s1 + $0x328] sm:$0xff]  }
  0x38   :  { %2539 = vmatprep.subr.bf16.mxu0 %v2838_v62  ;;  %v2898_v62 = vld [vmem:[%s3674_s1 + $0x360] sm:$0xff]  }
  0x39   :  { %2560 = vmatpush3.bf16.msra.mxu1 %v2837_v61  ;;  %v2897_v61 = vld [vmem:[%s3674_s1 + $0x3a8] sm:$0xff]  }
  0x3a   :  { %2561 = vmatprep.subr.bf16.mxu1 %v2840_v0  ;;  %v2900_v0 = vld [vmem:[%s3674_s1 + $0x3e0] sm:$0xff]  }
  0x3b   :  { %2540 = vmatpush3.bf16.msra.mxu0 %v2839_v63  ;;  %v2899_v63 = vld [vmem:[%s3674_s1 + $0x320] sm:$0xff]  }
  0x3c   :  { %2541 = vmatprep.subr.bf16.mxu0 %v2842_v2  ;;  %v2902_v2 = vld [vmem:[%s3674_s1 + $0x358] sm:$0xff]  }
  0x3d   :  { %2562 = vmatpush3.bf16.msra.mxu1 %v2841_v1  ;;  %v2901_v1 = vld [vmem:[%s3674_s1 + $0x3a0] sm:$0xff]  }
  0x3e   :  { %2563 = vmatprep.subr.bf16.mxu1 %v2844_v4  ;;  %v2904_v4 = vld [vmem:[%s3674_s1 + $0x3d8] sm:$0xff]  }
  0x3f   :  { %2542 = vmatpush3.bf16.msra.mxu0 %v2843_v3  ;;  %v2903_v3 = vld [vmem:[%s3674_s1 + $0x318] sm:$0xff]  }
  0x40   :  { %2571 = vmatprep.subr.bf16.mxu0 %v2848_v9  ;;  %v2909_v9 = vld [vmem:[%s3674_s1 + $0x390] sm:$0xff]  }
  0x41   :  { %2564 = vmatpush3.bf16.msra.mxu1 %v2847_v8  ;;  %v2908_v8 = vld [vmem:[%s3674_s1 + $0x3d0] sm:$0xff]  }
  0x42   :  { %1836 = vmatmul.mubr.bf16.vlgmr.msra.gmra.mxu0 %v2262_v6  ;;  %2593 = vmatprep.subr.bf16.mxu1 %v2852_v14  ;;  %v2906_v6 = vld [vmem:[%s3674_s1 + $0x350] sm:$0xff]   ;;  %v2914_v14 = vld [vmem:[%s3674_s1 + $0x340] sm:$0xff]  }
  0x43   :  { %2572 = vmatpush3.bf16.msra.mxu0 %v2851_v13  ;;  %1915 = vmatprep.mubr.bf16.mxu0 %v2267_v45  ;;  %v2913_v13 = vld [vmem:[%s3674_s1 + $0x388] sm:$0xff]   ;;  %v2943_v45 = vld [vmem:[%s3674_s1 + $0x410] sm:$0xff]  }
  0x44   :  { %1876 = vmatmul.mubr.bf16.vlgmr.msra.gmra.mxu1 %v2264_v11  ;;  %2573 = vmatprep.subr.bf16.mxu0 %v2854_v16  ;;  %v2911_v11 = vld [vmem:[%s3674_s1 + $0x308] sm:$0xff]   ;;  %v2916_v16 = vld [vmem:[%s3674_s1 + $0x3c0] sm:$0xff]  }
  0x45   :  { %2594 = vmatpush3.bf16.msra.mxu1 %v2853_v15  ;;  %1955 = vmatprep.mubr.bf16.mxu1 %v2269_v50  ;;  %v2915_v15 = vld [vmem:[%s3674_s1 + $0x300] sm:$0xff]   ;;  %v2948_v50 = vld [vmem:[%s3674_s1 + $0x4c8] sm:$0xff]  }
  0x46   :  { %2595 = vmatprep.subr.bf16.mxu1 %v2856_v18 }
  0x47   :  { %2574 = vmatpush3.bf16.msra.mxu0 %v2855_v17  ;;  %v21_v17 = vld [vmem:[%s3675_s0 + $0x30] sm:$0xff] }
  0x48   :  { %2575 = vmatprep.subr.bf16.mxu0 %v2858_v20  ;;  %v2270_v18 = vcombine.low %v21_v17, %v21_v17  ;;  %v2919_v20 = vld [vmem:[%s3674_s1 + $0x380] sm:$0xff]  }
  0x49   :  { %2596 = vmatpush3.bf16.msra.mxu1 %v2857_v19  ;;  %v2271_v19 = vcombine.high %v21_v17, %v21_v17  ;;  %v2977_v17 = vld [vmem:[%s3674_s1 + $0x598] sm:$0xff]  }
  0x4a   :  { %2597 = vmatprep.subr.bf16.mxu1 %v2860_v22  ;;  %v22_v22 = vld [vmem:[%s3675_s0 + $0x38] sm:$0xff] }
  0x4b   :  { %2576 = vmatpush3.bf16.msra.mxu0 %v2859_v21  ;;  %v2920_v21 = vld [vmem:[%s3674_s1 + $0x478] sm:$0xff]  }
  0x4c   :  { %2577 = vmatprep.subr.bf16.mxu0 %v2862_v24  ;;  %v2273_v24 = vcombine.high %v22_v22, %v22_v22 }
  0x4d   :  { %2598 = vmatpush3.bf16.msra.mxu1 %v2861_v23  ;;  %v2272_v23 = vcombine.low %v22_v22, %v22_v22  ;;  %v2982_v22 = vld [vmem:[%s3674_s1 + $0x548] sm:$0xff]  }
  0x4e   :  { %2599 = vmatprep.subr.bf16.mxu1 %v2864_v26  ;;  %v2924_v26 = vld [vmem:[%s3674_s1 + $0x4f8] sm:$0xff]  }
  0x4f   :  { %2578 = vmatpush3.bf16.msra.mxu0 %v2863_v25  ;;  %v2923_v25 = vld [vmem:[%s3674_s1 + $0x438] sm:$0xff]  }
  0x50   :  { %2579 = vmatprep.subr.bf16.mxu0 %v2866_v28  ;;  %v2926_v28 = vld [vmem:[%s3674_s1 + $0x470] sm:$0xff]  }
  0x51   :  { %2600 = vmatpush3.bf16.msra.mxu1 %v2865_v27  ;;  %v2925_v27 = vld [vmem:[%s3674_s1 + $0x4b8] sm:$0xff]  }
  0x52   :  { %2601 = vmatprep.subr.bf16.mxu1 %v2868_v30  ;;  %v2928_v30 = vld [vmem:[%s3674_s1 + $0x4f0] sm:$0xff]  }
  0x53   :  { %2580 = vmatpush3.bf16.msra.mxu0 %v2867_v29  ;;  %v2927_v29 = vld [vmem:[%s3674_s1 + $0x430] sm:$0xff]  }
  0x54   :  { %2581 = vmatprep.subr.bf16.mxu0 %v2870_v32  ;;  %v2930_v32 = vld [vmem:[%s3674_s1 + $0x468] sm:$0xff]  }
  0x55   :  { %2602 = vmatpush3.bf16.msra.mxu1 %v2869_v31  ;;  %v2929_v31 = vld [vmem:[%s3674_s1 + $0x4b0] sm:$0xff]  }
  0x56   :  { %2603 = vmatprep.subr.bf16.mxu1 %v2872_v34  ;;  %v2932_v34 = vld [vmem:[%s3674_s1 + $0x4e8] sm:$0xff]  }
  0x57   :  { %2582 = vmatpush3.bf16.msra.mxu0 %v2871_v33  ;;  %v2931_v33 = vld [vmem:[%s3674_s1 + $0x428] sm:$0xff]  }
  0x58   :  { %2583 = vmatprep.subr.bf16.mxu0 %v2874_v36  ;;  %v2934_v36 = vld [vmem:[%s3674_s1 + $0x460] sm:$0xff]  }
  0x59   :  { %2604 = vmatpush3.bf16.msra.mxu1 %v2873_v35  ;;  %v2933_v35 = vld [vmem:[%s3674_s1 + $0x4a8] sm:$0xff]  }
  0x5a   :  { %2605 = vmatprep.subr.bf16.mxu1 %v2876_v38  ;;  %v2936_v38 = vld [vmem:[%s3674_s1 + $0x4e0] sm:$0xff]  }
  0x5b   :  { %2584 = vmatpush3.bf16.msra.mxu0 %v2875_v37  ;;  %v2935_v37 = vld [vmem:[%s3674_s1 + $0x420] sm:$0xff]  }
  0x5c   :  { %2585 = vmatprep.subr.bf16.mxu0 %v2878_v40  ;;  %v2938_v40 = vld [vmem:[%s3674_s1 + $0x458] sm:$0xff]  }
  0x5d   :  { %2606 = vmatpush3.bf16.msra.mxu1 %v2877_v39  ;;  %v2937_v39 = vld [vmem:[%s3674_s1 + $0x4a0] sm:$0xff]  }
  0x5e   :  { %2607 = vmatprep.subr.bf16.mxu1 %v2880_v42  ;;  %v2940_v42 = vld [vmem:[%s3674_s1 + $0x4d8] sm:$0xff]  }
  0x5f   :  { %2586 = vmatpush3.bf16.msra.mxu0 %v2879_v41  ;;  %v2939_v41 = vld [vmem:[%s3674_s1 + $0x418] sm:$0xff]  }
  0x60   :  { %2615 = vmatprep.subr.bf16.mxu0 %v2884_v47  ;;  %v2945_v47 = vld [vmem:[%s3674_s1 + $0x490] sm:$0xff]  }
  0x61   :  { %2608 = vmatpush3.bf16.msra.mxu1 %v2883_v46  ;;  %v2944_v46 = vld [vmem:[%s3674_s1 + $0x4d0] sm:$0xff]  }
  0x62   :  { %1916 = vmatmul.mubr.bf16.vlgmr.msra.gmra.mxu0 %v2266_v44  ;;  %2637 = vmatprep.subr.bf16.mxu1 %v2888_v52  ;;  %v2942_v44 = vld [vmem:[%s3674_s1 + $0x450] sm:$0xff]   ;;  %v2950_v52 = vld [vmem:[%s3674_s1 + $0x440] sm:$0xff]  }
  0x63   :  { %2616 = vmatpush3.bf16.msra.mxu0 %v2887_v51  ;;  %1995 = vmatprep.mubr.bf16.mxu0 %v2271_v19  ;;  %v2949_v51 = vld [vmem:[%s3674_s1 + $0x488] sm:$0xff]   ;;  %v2979_v19 = vld [vmem:[%s3674_s1 + $0x510] sm:$0xff]  }
  0x64   :  { %1956 = vmatmul.mubr.bf16.vlgmr.msra.gmra.mxu1 %v2268_v49  ;;  %2617 = vmatprep.subr.bf16.mxu0 %v2890_v54  ;;  %v2947_v49 = vld [vmem:[%s3674_s1 + $0x408] sm:$0xff]   ;;  %v2952_v54 = vld [vmem:[%s3674_s1 + $0x4c0] sm:$0xff]  }
  0x65   :  { %2638 = vmatpush3.bf16.msra.mxu1 %v2889_v53  ;;  %2035 = vmatprep.mubr.bf16.mxu1 %v2273_v24  ;;  %v2951_v53 = vld [vmem:[%s3674_s1 + $0x400] sm:$0xff]   ;;  %v2984_v24 = vld [vmem:[%s3674_s1 + $0x5c8] sm:$0xff]  }
  0x66   :  { %2639 = vmatprep.subr.bf16.mxu1 %v2892_v56 }
  0x67   :  { %2618 = vmatpush3.bf16.msra.mxu0 %v2891_v55  ;;  %v23_v55 = vld [vmem:[%s3675_s0 + $0x40] sm:$0xff] }
  0x68   :  { %2619 = vmatprep.subr.bf16.mxu0 %v2894_v58  ;;  %v2274_v56 = vcombine.low %v23_v55, %v23_v55  ;;  %v2955_v58 = vld [vmem:[%s3674_s1 + $0x480] sm:$0xff]  }
  0x69   :  { %2640 = vmatpush3.bf16.msra.mxu1 %v2893_v57  ;;  %v2275_v57 = vcombine.high %v23_v55, %v23_v55 }
  0x6a   :  { %2641 = vmatprep.subr.bf16.mxu1 %v2896_v60  ;;  %v24_v60 = vld [vmem:[%s3675_s0 + $0x48] sm:$0xff] }
  0x6b   :  { %2620 = vmatpush3.bf16.msra.mxu0 %v2895_v59  ;;  %v2956_v59 = vld [vmem:[%s3674_s1 + $0x578] sm:$0xff]  }
  0x6c   :  { %2621 = vmatprep.subr.bf16.mxu0 %v2898_v62  ;;  %v2277_v62 = vcombine.high %v24_v60, %v24_v60 }
  0x6d   :  { %2642 = vmatpush3.bf16.msra.mxu1 %v2897_v61  ;;  %v2276_v61 = vcombine.low %v24_v60, %v24_v60 }
  0x6e   :  { %2643 = vmatprep.subr.bf16.mxu1 %v2900_v0  ;;  %v2960_v0 = vld [vmem:[%s3674_s1 + $0x5f8] sm:$0xff]  }
  0x6f   :  { %2622 = vmatpush3.bf16.msra.mxu0 %v2899_v63  ;;  %v2959_v63 = vld [vmem:[%s3674_s1 + $0x538] sm:$0xff]  }
  0x70   :  { %2623 = vmatprep.subr.bf16.mxu0 %v2902_v2  ;;  %v2962_v2 = vld [vmem:[%s3674_s1 + $0x570] sm:$0xff]  }
  0x71   :  { %2644 = vmatpush3.bf16.msra.mxu1 %v2901_v1  ;;  %v2961_v1 = vld [vmem:[%s3674_s1 + $0x5b8] sm:$0xff]  }
  0x72   :  { %2645 = vmatprep.subr.bf16.mxu1 %v2904_v4  ;;  %v2964_v4 = vld [vmem:[%s3674_s1 + $0x5f0] sm:$0xff]  }
  0x73   :  { %2624 = vmatpush3.bf16.msra.mxu0 %v2903_v3  ;;  %v2963_v3 = vld [vmem:[%s3674_s1 + $0x530] sm:$0xff]  }
  0x74   :  { %2625 = vmatprep.subr.bf16.mxu0 %v2906_v6  ;;  %v2966_v6 = vld [vmem:[%s3674_s1 + $0x568] sm:$0xff]  }
  0x75   :  { %2646 = vmatpush3.bf16.msra.mxu1 %v2905_v5  ;;  %v2965_v5 = vld [vmem:[%s3674_s1 + $0x5b0] sm:$0xff]  }
  0x76   :  { %2647 = vmatprep.subr.bf16.mxu1 %v2908_v8  ;;  %v2968_v8 = vld [vmem:[%s3674_s1 + $0x5e8] sm:$0xff]  }
  0x77   :  { %2626 = vmatpush3.bf16.msra.mxu0 %v2907_v7  ;;  %v2967_v7 = vld [vmem:[%s3674_s1 + $0x528] sm:$0xff]  }
  0x78   :  { %2627 = vmatprep.subr.bf16.mxu0 %v2910_v10  ;;  %v2970_v10 = vld [vmem:[%s3674_s1 + $0x560] sm:$0xff]  }
  0x79   :  { %2648 = vmatpush3.bf16.msra.mxu1 %v2909_v9  ;;  %v2969_v9 = vld [vmem:[%s3674_s1 + $0x5a8] sm:$0xff]  }
  0x7a   :  { %2649 = vmatprep.subr.bf16.mxu1 %v2912_v12  ;;  %v2972_v12 = vld [vmem:[%s3674_s1 + $0x5e0] sm:$0xff]  }
  0x7b   :  { %2628 = vmatpush3.bf16.msra.mxu0 %v2911_v11  ;;  %v2971_v11 = vld [vmem:[%s3674_s1 + $0x520] sm:$0xff]  }
  0x7c   :  { %2629 = vmatprep.subr.bf16.mxu0 %v2914_v14  ;;  %v2974_v14 = vld [vmem:[%s3674_s1 + $0x558] sm:$0xff]  }
  0x7d   :  { %2650 = vmatpush3.bf16.msra.mxu1 %v2913_v13  ;;  %v2973_v13 = vld [vmem:[%s3674_s1 + $0x5a0] sm:$0xff]  }
  0x7e   :  { %2651 = vmatprep.subr.bf16.mxu1 %v2916_v16  ;;  %v2976_v16 = vld [vmem:[%s3674_s1 + $0x5d8] sm:$0xff]  }
  0x7f   :  { %2630 = vmatpush3.bf16.msra.mxu0 %v2915_v15  ;;  %v2975_v15 = vld [vmem:[%s3674_s1 + $0x518] sm:$0xff]  }
  0x80   :  { %2659 = vmatprep.subr.bf16.mxu0 %v2920_v21  ;;  %v2981_v21 = vld [vmem:[%s3674_s1 + $0x590] sm:$0xff]  }
  0x81   :  { %2652 = vmatpush3.bf16.msra.mxu1 %v2919_v20  ;;  %v2980_v20 = vld [vmem:[%s3674_s1 + $0x5d0] sm:$0xff]  }
  0x82   :  { %1996 = vmatmul.mubr.bf16.vlgmr.msra.gmra.mxu0 %v2270_v18  ;;  %2681 = vmatprep.subr.bf16.mxu1 %v2924_v26  ;;  %v2978_v18 = vld [vmem:[%s3674_s1 + $0x550] sm:$0xff]   ;;  %v2986_v26 = vld [vmem:[%s3674_s1 + $0x540] sm:$0xff]  }
  0x83   :  { %2660 = vmatpush3.bf16.msra.mxu0 %v2923_v25  ;;  %2075 = vmatprep.mubr.bf16.mxu0 %v2275_v57  ;;  %v2985_v25 = vld [vmem:[%s3674_s1 + $0x588] sm:$0xff]  }
  0x84   :  { %2036 = vmatmul.mubr.bf16.vlgmr.msra.gmra.mxu1 %v2272_v23  ;;  %2661 = vmatprep.subr.bf16.mxu0 %v2926_v28  ;;  %v2983_v23 = vld [vmem:[%s3674_s1 + $0x508] sm:$0xff]   ;;  %v2988_v28 = vld [vmem:[%s3674_s1 + $0x5c0] sm:$0xff]  }
  0x85   :  { %2682 = vmatpush3.bf16.msra.mxu1 %v2925_v27  ;;  %2115 = vmatprep.mubr.bf16.mxu1 %v2277_v62  ;;  %v2987_v27 = vld [vmem:[%s3674_s1 + $0x500] sm:$0xff]  }
  0x86   :  { %2683 = vmatprep.subr.bf16.mxu1 %v2928_v30 }
  0x87   :  { %2662 = vmatpush3.bf16.msra.mxu0 %v2927_v29  ;;  %v25_v29 = vld [vmem:[%s3675_s0 + $0x50] sm:$0xff] }
  0x88   :  { %2663 = vmatprep.subr.bf16.mxu0 %v2930_v32  ;;  %v2278_v30 = vcombine.low %v25_v29, %v25_v29  ;;  %v2991_v32 = vld [vmem:[%s3674_s1 + $0x580] sm:$0xff]  }
  0x89   :  { %2684 = vmatpush3.bf16.msra.mxu1 %v2929_v31  ;;  %v2279_v31 = vcombine.high %v25_v29, %v25_v29 }
  0x8a   :  { %2685 = vmatprep.subr.bf16.mxu1 %v2932_v34  ;;  %v3007_v34 = vmov 0.0  }
  0x8b   :  { %2664 = vmatpush3.bf16.msra.mxu0 %v2931_v33  ;;  %v26_v33 = vld [vmem:[%s3675_s0 + $0x58] sm:$0xff] }
  0x8c   :  { %2665 = vmatprep.subr.bf16.mxu0 %v2934_v36  ;;  %v2281_v36 = vcombine.high %v26_v33, %v26_v33 }
  0x8d   :  { %2686 = vmatpush3.bf16.msra.mxu1 %v2933_v35  ;;  %v2280_v35 = vcombine.low %v26_v33, %v26_v33 }
  0x8e   :  { %2687 = vmatprep.subr.bf16.mxu1 %v2936_v38  ;;  %v2995_v38 = vld [vmem:[%s3674_s1 + $0x630] sm:$0xff]  }
  0x8f   :  { %2666 = vmatpush3.bf16.msra.mxu0 %v2935_v37  ;;  %v2994_v37 = vld [vmem:[%s3674_s1 + $0x638] sm:$0xff]  }
  0x90   :  { %2667 = vmatprep.subr.bf16.mxu0 %v2938_v40  ;;  %v2997_v40 = vld [vmem:[%s3674_s1 + $0x620] sm:$0xff]  }
  0x91   :  { %2688 = vmatpush3.bf16.msra.mxu1 %v2937_v39  ;;  %v2996_v39 = vld [vmem:[%s3674_s1 + $0x628] sm:$0xff]  }
  0x92   :  { %2689 = vmatprep.subr.bf16.mxu1 %v2940_v42  ;;  %v2999_v42 = vld [vmem:[%s3674_s1 + $0x610] sm:$0xff]  }
  0x93   :  { %2668 = vmatpush3.bf16.msra.mxu0 %v2939_v41  ;;  %v2998_v41 = vld [vmem:[%s3674_s1 + $0x618] sm:$0xff]  }
  0x94   :  { %2669 = vmatprep.subr.bf16.mxu0 %v2942_v44  ;;  %v3001_v44 = vld [vmem:[%s3674_s1 + $0x600] sm:$0xff]  }
  0x95   :  { %2690 = vmatpush3.bf16.msra.mxu1 %v2941_v43  ;;  %v3000_v43 = vld [vmem:[%s3674_s1 + $0x608] sm:$0xff]  }
  0x96   :  { %2691 = vmatprep.subr.bf16.mxu1 %v2944_v46 }
  0x97   :  { %2670 = vmatpush3.bf16.msra.mxu0 %v2943_v45  ;;  %v3002_v45 = vld [vmem:[%s3675_s0 + $0x60] ss:$0 sps:$4 sm:$0xff]  }
  0x98   :  { %2671 = vmatprep.subr.bf16.mxu0 %v2946_v48 }
  0x99   :  { %2692 = vmatpush3.bf16.msra.mxu1 %v2945_v47  ;;  %v2257_v47 = vld [vmem:[%s3676_s2] ss:$0 sm:$0xff] }
  0x9a   :  { %2693 = vmatprep.subr.bf16.mxu1 %v2948_v50 }
  0x9b   :  { %2672 = vmatpush3.bf16.msra.mxu0 %v2947_v49 }
  0x9c   :  { %2673 = vmatprep.subr.bf16.mxu0 %v2950_v52 }
  0x9d   :  { %2694 = vmatpush3.bf16.msra.mxu1 %v2949_v51 }
  0x9e   :  { %2695 = vmatprep.subr.bf16.mxu1 %v2952_v54 }
  0x9f   :  { %2674 = vmatpush3.bf16.msra.mxu0 %v2951_v53 }
  0xa0   :  { %2703 = vmatprep.subr.bf16.mxu0 %v2956_v59 }
  0xa1   :  { %2696 = vmatpush3.bf16.msra.mxu1 %v2955_v58 }
  0xa2   :  { %2076 = vmatmul.mubr.bf16.vlgmr.msra.gmra.mxu0 %v2274_v56  ;;  %2725 = vmatprep.subr.bf16.mxu1 %v2960_v0 }
  0xa3   :  { %2704 = vmatpush3.bf16.msra.mxu0 %v2959_v63  ;;  %2155 = vmatprep.mubr.bf16.mxu0 %v2279_v31 }
  0xa4   :  { %2116 = vmatmul.mubr.bf16.vlgmr.msra.gmra.mxu1 %v2276_v61  ;;  %2705 = vmatprep.subr.bf16.mxu0 %v2962_v2 }
  0xa5   :  { %2726 = vmatpush3.bf16.msra.mxu1 %v2961_v1  ;;  %2195 = vmatprep.mubr.bf16.mxu1 %v2281_v36 }
  0xa6   :  { %2727 = vmatprep.subr.bf16.mxu1 %v2964_v4 }
  0xa7   :  { %2706 = vmatpush3.bf16.msra.mxu0 %v2963_v3 }
  0xa8   :  { %2707 = vmatprep.subr.bf16.mxu0 %v2966_v6 }
  0xa9   :  { %2728 = vmatpush3.bf16.msra.mxu1 %v2965_v5 }
  0xaa   :  { %2729 = vmatprep.subr.bf16.mxu1 %v2968_v8 }
  0xab   :  { %2708 = vmatpush3.bf16.msra.mxu0 %v2967_v7 }
  0xac   :  { %2709 = vmatprep.subr.bf16.mxu0 %v2970_v10 }
  0xad   :  { %2730 = vmatpush3.bf16.msra.mxu1 %v2969_v9 }
  0xae   :  { %2731 = vmatprep.subr.bf16.mxu1 %v2972_v12 }
  0xaf   :  { %2710 = vmatpush3.bf16.msra.mxu0 %v2971_v11 }
  0xb0   :  { %2711 = vmatprep.subr.bf16.mxu0 %v2974_v14 }
  0xb1   :  { %2732 = vmatpush3.bf16.msra.mxu1 %v2973_v13 }
  0xb2   :  { %2733 = vmatprep.subr.bf16.mxu1 %v2976_v16 }
  0xb3   :  { %2712 = vmatpush3.bf16.msra.mxu0 %v2975_v15 }
  0xb4   :  { %2713 = vmatprep.subr.bf16.mxu0 %v2978_v18 }
  0xb5   :  { %2734 = vmatpush3.bf16.msra.mxu1 %v2977_v17 }
  0xb6   :  { %2735 = vmatprep.subr.bf16.mxu1 %v2980_v20 }
  0xb7   :  { %2714 = vmatpush3.bf16.msra.mxu0 %v2979_v19 }
  0xb8   :  { %2715 = vmatprep.subr.bf16.mxu0 %v2982_v22 }
  0xb9   :  { %2736 = vmatpush3.bf16.msra.mxu1 %v2981_v21 }
  0xba   :  { %2737 = vmatprep.subr.bf16.mxu1 %v2984_v24 }
  0xbb   :  { %2716 = vmatpush3.bf16.msra.mxu0 %v2983_v23 }
  0xbc   :  { %2717 = vmatprep.subr.bf16.mxu0 %v2986_v26 }
  0xbd   :  { %2738 = vmatpush3.bf16.msra.mxu1 %v2985_v25 }
  0xbe   :  { %2739 = vmatprep.subr.bf16.mxu1 %v2988_v28 }
  0xbf   :  { %2718 = vmatpush3.bf16.msra.mxu0 %v2987_v27 }
  0xc0   :  { %2756 = vmatprep.subr.bf16.mxu0 %v3007_v34 }
  0xc1   :  { %2740 = vmatpush3.bf16.msra.mxu1 %v2991_v32 }
  0xc2   :  { %2156 = vmatmul.mubr.bf16.vlgmr.msra.gmra.mxu0 %v2278_v30 }
  0xc3   :  { %2757 = vmatpush3.bf16.msra.mxu0 %v2994_v37  ;;  %2772 = vmatprep.mubr.msk.bf16.mxu0 %vm3008_vm0, %v3007_v34 }
  0xc4   :  { %2196 = vmatmul.mubr.bf16.vlgmr.msra.gmra.mxu1 %v2280_v35  ;;  %2758 = vmatprep.subr.bf16.mxu0 %v3007_v34 }
  0xc7   :  { %2759 = vmatpush3.bf16.msra.mxu0 %v2995_v38 }
  0xc8   :  { %2760 = vmatprep.subr.bf16.mxu0 %v3007_v34 }
  0xcb   :  { %2761 = vmatpush3.bf16.msra.mxu0 %v2996_v39 }
  0xcc   :  { %2762 = vmatprep.subr.bf16.mxu0 %v3007_v34 }
  0xcf   :  { %2763 = vmatpush3.bf16.msra.mxu0 %v2997_v40 }
  0xd0   :  { %2764 = vmatprep.subr.bf16.mxu0 %v3007_v34 }
  0xd3   :  { %2765 = vmatpush3.bf16.msra.mxu0 %v2998_v41 }
  0xd4   :  { %2766 = vmatprep.subr.bf16.mxu0 %v3007_v34 }
  0xd7   :  { %2767 = vmatpush3.bf16.msra.mxu0 %v2999_v42 }
  0xd8   :  { %2768 = vmatprep.subr.bf16.mxu0 %v3007_v34 }
  0xdb   :  { %2769 = vmatpush3.bf16.msra.mxu0 %v3000_v43 }
  0xdc   :  { %2770 = vmatprep.subr.bf16.mxu0 %v3007_v34 }
  0xdf   :  { %2771 = vmatpush3.bf16.msra.mxu0 %v3001_v44 }
  0xe2   :  { %v2499_v46 = vpop.f32.mrf.mxu0  ;;  %2773 = vmatmul.mubr.bf16.vlgmr.msra.gmra.mxu0 %v3002_v45 }
  0xe4   :  { %v2500_v48 = vpop.f32.mrf.mxu0  ;;  %v2521_v49 = vpop.f32.mrf.mxu1 }
  0xe5   :  { %v2501_v50 = vadd.f32 %v2500_v48, %v2499_v46 }
  0xe6   :  { %v2502_v51 = vpop.f32.mrf.mxu0  ;;  %v2522_v52 = vpop.f32.mrf.mxu1 }
  0xe7   :  { %v1758_v53 = vadd.f32 %v2501_v50, %v2257_v47  ;;  %v2523_v54 = vadd.f32 %v2522_v52, %v2521_v49 }
  0xe8   :  { %v2503_v55 = vpop.f32.mrf.mxu0  ;;  %v2524_v56 = vpop.f32.mrf.mxu1 }
  0xe9   :  { %v1798_v57 = vadd.f32 %v2523_v54, %v1758_v53 }
  0xea   :  { %v2525_v58 = vpop.f32.mrf.mxu1 }
 0x102   :  { %v2543_v59 = vpop.f32.mrf.mxu0 }
 0x104   :  { %v2544_v60 = vpop.f32.mrf.mxu0  ;;  %v2565_v62 = vpop.f32.mrf.mxu1 }
 0x105   :  { %v2545_v61 = vadd.f32 %v2544_v60, %v2543_v59 }
 0x106   :  { %v2546_v63 = vpop.f32.mrf.mxu0  ;;  %v2566_v1 = vpop.f32.mrf.mxu1 }
 0x107   :  { %v1838_v0 = vadd.f32 %v2545_v61, %v1798_v57  ;;  %v2567_v2 = vadd.f32 %v2566_v1, %v2565_v62 }
 0x108   :  { %v2547_v3 = vpop.f32.mrf.mxu0  ;;  %v2568_v4 = vpop.f32.mrf.mxu1 }
 0x109   :  { %v1878_v5 = vadd.f32 %v2567_v2, %v1838_v0 }
 0x10a   :  { %v2569_v6 = vpop.f32.mrf.mxu1 }
 0x122   :  { %v2587_v7 = vpop.f32.mrf.mxu0 }
 0x124   :  { %v2588_v8 = vpop.f32.mrf.mxu0  ;;  %v2609_v9 = vpop.f32.mrf.mxu1 }
 0x125   :  { %v2589_v10 = vadd.f32 %v2588_v8, %v2587_v7 }
 0x126   :  { %v2590_v11 = vpop.f32.mrf.mxu0  ;;  %v2610_v12 = vpop.f32.mrf.mxu1 }
 0x127   :  { %v1918_v13 = vadd.f32 %v2589_v10, %v1878_v5  ;;  %v2611_v14 = vadd.f32 %v2610_v12, %v2609_v9 }
 0x128   :  { %v2591_v15 = vpop.f32.mrf.mxu0  ;;  %v2612_v16 = vpop.f32.mrf.mxu1 }
 0x129   :  { %v1958_v17 = vadd.f32 %v2611_v14, %v1918_v13 }
 0x12a   :  { %v2613_v18 = vpop.f32.mrf.mxu1 }
 0x142   :  { %v2631_v19 = vpop.f32.mrf.mxu0 }
 0x144   :  { %v2632_v20 = vpop.f32.mrf.mxu0  ;;  %v2653_v21 = vpop.f32.mrf.mxu1 }
 0x145   :  { %v2633_v22 = vadd.f32 %v2632_v20, %v2631_v19 }
 0x146   :  { %v2634_v23 = vpop.f32.mrf.mxu0  ;;  %v2654_v24 = vpop.f32.mrf.mxu1 }
 0x147   :  { %v1998_v25 = vadd.f32 %v2633_v22, %v1958_v17  ;;  %v2655_v26 = vadd.f32 %v2654_v24, %v2653_v21 }
 0x148   :  { %v2635_v27 = vpop.f32.mrf.mxu0  ;;  %v2656_v28 = vpop.f32.mrf.mxu1 }
 0x149   :  { %v2038_v29 = vadd.f32 %v2655_v26, %v1998_v25 }
 0x14a   :  { %v2657_v30 = vpop.f32.mrf.mxu1 }
 0x162   :  { %v2675_v31 = vpop.f32.mrf.mxu0 }
 0x164   :  { %v2676_v32 = vpop.f32.mrf.mxu0  ;;  %v2697_v33 = vpop.f32.mrf.mxu1 }
 0x165   :  { %v2677_v47 = vadd.f32 %v2676_v32, %v2675_v31 }
 0x166   :  { %v2678_v34 = vpop.f32.mrf.mxu0  ;;  %v2698_v35 = vpop.f32.mrf.mxu1 }
 0x167   :  { %v2078_v48 = vadd.f32 %v2677_v47, %v2038_v29  ;;  %v2699_v49 = vadd.f32 %v2698_v35, %v2697_v33 }
 0x168   :  { %v2679_v36 = vpop.f32.mrf.mxu0  ;;  %v2700_v37 = vpop.f32.mrf.mxu1 }
 0x169   :  { %v2118_v51 = vadd.f32 %v2699_v49, %v2078_v48 }
 0x16a   :  { %v2701_v38 = vpop.f32.mrf.mxu1 }
 0x182   :  { %v2719_v39 = vpop.f32.mrf.mxu0 }
 0x184   :  { %v2720_v40 = vpop.f32.mrf.mxu0  ;;  %v2741_v41 = vpop.f32.mrf.mxu1 }
 0x185   :  { %v2721_v50 = vadd.f32 %v2720_v40, %v2719_v39 }
 0x186   :  { %v2722_v42 = vpop.f32.mrf.mxu0  ;;  %v2742_v43 = vpop.f32.mrf.mxu1 }
 0x187   :  { %v2158_v52 = vadd.f32 %v2721_v50, %v2118_v51  ;;  %v2743_v53 = vadd.f32 %v2742_v43, %v2741_v41 }
 0x188   :  { %v2723_v44 = vpop.f32.mrf.mxu0  ;;  %v2744_v45 = vpop.f32.mrf.mxu1 }
 0x189   :  { %v2198_v54 = vadd.f32 %v2743_v53, %v2158_v52 }
 0x18a   :  { %v2745_v46 = vpop.f32.mrf.mxu1 }
 0x1a2   :  { %v2237_v55 = vpop.f32.mrf.mxu0 }
 0x1a3   :  { %v2238_v56 = vadd.f32 %v2237_v55, %v2198_v54 }
 0x1a4   :  { %v2774_v57 = vpop.f32.mrf.mxu0 }
 0x1a5   :  { %2243 = vmax.xlane.f32.xlu0 %v2238_v56 }
 0x1a6   :  { %v2240_v58 = vpop.f32.mrf.mxu0 }
 0x1a8   :  { %v2775_v59 = vpop.f32.mrf.mxu0 }
 0x22e   :  { %v2244_v60 = vpop.xlane.xlu0 %2243 }
 0x22f   :  { %v2245_v61 = vsub.f32 %v2238_v56, %v2244_v60 }
 0x231   :  { %v2246_v62 = vmul.f32 1.442695, %v2245_v61 }
 0x233   :  { %3003 = vpow2.f32 %v2246_v62 }
 0x240   :  { %v3004_v63 = vpop.eup %3003 }
 0x241   :  { %2248 = vadd.xlane.f32.xlu0 %v3004_v63 }
 0x2ca   :  { %v2249_v0 = vpop.xlane.xlu0 %2248 }
 0x2cb   :  { %3005 = vrcp.f32 %v2249_v0 }
 0x2d8   :  { %v3006_v1 = vpop.eup %3005 }
 0x2d9   :  { %v2251_v2 = vmul.f32 %v3006_v1, %v3004_v63 }
 0x2db   :  { %2252 = vst [vmem:[%s3677_s3] sm:$0xff] %v2251_v2 }

</bundles_post_ra>
